<compile_context>
chip_gen: v7x
topology: tpu7x:2x2x1
jax: 0.10.0
libtpu: 0.0.40
codegen_flags: <defaults>
</compile_context>

<pallas_src>
import math
import jax
import jax.numpy as jnp
from jax.experimental import pallas as pl
from jax.experimental.pallas import tpu as pltpu

# ----------------------------- configuration --------------------------------
N_UNITS = 32          # model dim (features of the LayerNorm in the spec)
N_HEADS = 4
D_K = N_UNITS // N_HEADS
D_FF = 64             # FFN hidden dim
N_BLOCKS = 2          # depth of the transformer stack
VOCAB = 64
VOCAB_PAD = 128       # lane-dense output head (padded cols carry -1e30 bias)
SEQ = 8
BATCH = 2
EPS = 1e-6

# packed per-block matrix slab layout: (64 rows, 224 lanes)
#   [0:32,   0: 96]  wqkv = [Wq/sqrt(dk) | Wk | Wv]   (scale folded in at pack time)
#   [0:32,  96:128]  Wo
#   [0:32, 128:192]  W1
#   [0:64, 192:224]  W2
SLAB_ROWS, SLAB_COLS = 64, 4 * N_UNITS + D_FF + N_UNITS   # (64, 224)


# --------------------------- LayerNorm (the spec) ----------------------------
def layer_norm_spec(x, gamma, beta):
    """Exactly the PyTorch LayerNorm module:
         mean = x.mean(-1); std = x.std(-1)  (UNBIASED, divisor N-1)
         out  = a_2 * (x - mean) / (std + eps) + b_2"""
    mean = jnp.mean(x, axis=-1, keepdims=True)
    var = jnp.sum((x - mean) ** 2, axis=-1, keepdims=True) * (1.0 / (x.shape[-1] - 1))
    return gamma * (x - mean) / (jnp.sqrt(var) + EPS) + beta


# ------------------------------ fused kernel ---------------------------------
def fused_forward_kernel(x_ref, amask_ref, wblk_ref, vec_ref, head_ref, out_ref):
    # x     : (B*S, D)   activations, batch flattened into sublanes
    # amask : (B*S, B*S) additive mask, 0 = attend, -1e9 = masked (causal + cross-batch)
    x = x_ref[...]
    amask = amask_ref[...]

    for blk in range(N_BLOCKS):        # static unroll; all weights stay resident in VMEM
        W = wblk_ref[blk]              # (64, 224) packed matrices
        V = vec_ref[blk]               # (8, 96)   packed vectors
        wqkv = W[0:N_UNITS, 0:3 * N_UNITS]                      # (32, 96)
        wo   = W[0:N_UNITS, 3 * N_UNITS:4 * N_UNITS]            # (32, 32)
        w1   = W[0:N_UNITS, 4 * N_UNITS:4 * N_UNITS + D_FF]     # (32, 64)
        w2   = W[:, 4 * N_UNITS + D_FF:SLAB_COLS]               # (64, 32)
        bqkv  = V[0:1, 0:3 * N_UNITS]      # (1, 96)  [bq/sqrt(dk) | bk | bv]
        bo    = V[1:2, 0:N_UNITS]
        ln1_g = V[2:3, 0:N_UNITS]
        ln1_b = V[3:4, 0:N_UNITS]
        b1    = V[4:5, 0:D_FF]
        b2    = V[5:6, 0:N_UNITS]
        ln2_g = V[6:7, 0:N_UNITS]
        ln2_b = V[7:8, 0:N_UNITS]

        # ---- multi-head self-attention sublayer (pre-LN, residual) ----
        h = layer_norm_spec(x, ln1_g, ln1_b)                                 # (BS, D)
        # ONE lane-dense QKV matmul; Wq/bq already carry the 1/sqrt(dk) scale.
        proj = jnp.dot(h, wqkv, preferred_element_type=jnp.float32) + bqkv   # (BS, 96)

        ctx_parts = []
        for hd in range(N_HEADS):      # per-head score/context math (inherently per-head)
            q = proj[:, hd * D_K:(hd + 1) * D_K]                             # (BS, dk)
            k = proj[:, N_UNITS + hd * D_K:N_UNITS + (hd + 1) * D_K]
            v = proj[:, 2 * N_UNITS + hd * D_K:2 * N_UNITS + (hd + 1) * D_K]
            s = jax.lax.dot_general(q, k, (((1,), (1,)), ((), ())),
                                    preferred_element_type=jnp.float32) + amask  # (BS, BS)
            # no max-subtraction: unmasked scores are O(10) << 88 (scale pre-folded,
            # LayerNormed inputs); masked entries exp(-1e9) underflow cleanly to 0.
            e = jnp.exp(s)
            p = e * pl.reciprocal(jnp.sum(e, axis=-1, keepdims=True), approx=True)
            ctx_parts.append(jnp.dot(p, v, preferred_element_type=jnp.float32))  # (BS, dk)

        ctx = jnp.concatenate(ctx_parts, axis=-1)                            # (BS, D)
        # single output projection against the un-split Wo (== concat(heads) @ Wo)
        x = x + jnp.dot(ctx, wo, preferred_element_type=jnp.float32) + bo
        # dropout is identity (eval / p = 0)

        # ---- position-wise feed-forward sublayer (pre-LN, residual) ----
        h2 = layer_norm_spec(x, ln2_g, ln2_b)
        f = jnp.maximum(jnp.dot(h2, w1, preferred_element_type=jnp.float32) + b1, 0.0)
        x = x + jnp.dot(f, w2, preferred_element_type=jnp.float32) + b2

    # ---- output head: final LayerNorm, Linear(D -> VOCAB_PAD lane-dense), log_softmax ----
    HV = head_ref[...]                               # (40, 128)
    wout  = HV[0:N_UNITS, :]                         # (32, 128), zero in padded cols
    bout  = HV[N_UNITS:N_UNITS + 1, :]               # (1, 128), -1e30 in padded cols
    lnf_g = HV[N_UNITS + 1:N_UNITS + 2, 0:N_UNITS]
    lnf_b = HV[N_UNITS + 2:N_UNITS + 3, 0:N_UNITS]

    hf = layer_norm_spec(x, lnf_g, lnf_b)
    logits = jnp.dot(hf, wout, preferred_element_type=jnp.float32) + bout    # (BS, 128)
    z = logits - jnp.max(logits, axis=-1, keepdims=True)
    out_ref[...] = z - jnp.log(jnp.sum(jnp.exp(z), axis=-1, keepdims=True))


# --------------------------- host-side param packing -------------------------
def pack_params(params):
    """Pack all per-block parameters into 3 buffers (matrix slab, vector slab, head slab)."""
    inv_s = 1.0 / math.sqrt(D_K)
    wblk, vecs = [], []
    for p in params["blocks"]:
        slab = jnp.zeros((SLAB_ROWS, SLAB_COLS), jnp.float32)
        wqkv2d = jnp.concatenate([p["wq"] * inv_s, p["wk"], p["wv"]], axis=1)    # (32, 96)
        slab = slab.at[0:N_UNITS, 0:3 * N_UNITS].set(wqkv2d)
        slab = slab.at[0:N_UNITS, 3 * N_UNITS:4 * N_UNITS].set(p["wo"])
        slab = slab.at[0:N_UNITS, 4 * N_UNITS:4 * N_UNITS + D_FF].set(p["w1"])
        slab = slab.at[:, 4 * N_UNITS + D_FF:SLAB_COLS].set(p["w2"])
        wblk.append(slab)

        v = jnp.zeros((8, 3 * N_UNITS), jnp.float32)
        v = v.at[0, 0:3 * N_UNITS].set(
            jnp.concatenate([p["bq"] * inv_s, p["bk"], p["bv"]]))
        v = v.at[1, 0:N_UNITS].set(p["bo"])
        v = v.at[2, 0:N_UNITS].set(p["ln1_g"])
        v = v.at[3, 0:N_UNITS].set(p["ln1_b"])
        v = v.at[4, 0:D_FF].set(p["b1"])
        v = v.at[5, 0:N_UNITS].set(p["b2"])
        v = v.at[6, 0:N_UNITS].set(p["ln2_g"])
        v = v.at[7, 0:N_UNITS].set(p["ln2_b"])
        vecs.append(v)

    head = jnp.zeros((40, VOCAB_PAD), jnp.float32)
    head = head.at[0:N_UNITS, 0:VOCAB].set(params["wout"])          # padded cols stay 0
    head = head.at[N_UNITS, :].set(jnp.full((VOCAB_PAD,), -1e30, jnp.float32))
    head = head.at[N_UNITS, 0:VOCAB].set(params["bout"])            # pad bias = -1e30
    head = head.at[N_UNITS + 1, 0:N_UNITS].set(params["lnf_g"])
    head = head.at[N_UNITS + 2, 0:N_UNITS].set(params["lnf_b"])

    return {"emb": params["emb"], "wblk": jnp.stack(wblk), "vecs": jnp.stack(vecs),
            "head": head}


def _block_diag_additive_mask(mask):
    """(B,S,S) 0/1 mask -> (B*S, B*S) additive mask: 0 keep, -1e9 for masked or cross-batch."""
    B, S, _ = mask.shape
    same_batch = jnp.eye(B, dtype=mask.dtype)                         # (B, B)
    allowed = same_batch[:, None, :, None] * mask[:, :, None, :]      # (B, S, B, S)
    return jnp.where(allowed > 0, 0.0, -1e9).astype(jnp.float32).reshape(B * S, B * S)


# ------------------------------- pallas wrapper -------------------------------
def _full_vmem_spec(a):
    zeros = (0,) * a.ndim
    return pl.BlockSpec(a.shape, lambda i, z=zeros: z)    # whole array resident in VMEM


@jax.jit
def full_transformer_forward(tokens, mask, packed):
    B, S = tokens.shape
    # embedding gather stays in plain JAX (glue); batch flattened into sublanes
    x2d = (packed["emb"][tokens] * math.sqrt(N_UNITS)).reshape(B * S, N_UNITS)
    amask = _block_diag_additive_mask(mask)               # (B*S, B*S)

    operands = (x2d, amask, packed["wblk"], packed["vecs"], packed["head"])

    logp = pl.pallas_call(
        fused_forward_kernel,
        out_shape=jax.ShapeDtypeStruct((B * S, VOCAB_PAD), jnp.float32),
        grid=(1,),                                        # single fused step (see v7x note)
        in_specs=[_full_vmem_spec(a) for a in operands],
        out_specs=pl.BlockSpec((B * S, VOCAB_PAD), lambda i: (0, 0)),
        compiler_params=pltpu.CompilerParams(
            dimension_semantics=("arbitrary",),
            # Resident payload ~0.15 MB; BlockSpec double-buffers every input even at
            # grid=(1,), so budget ~2x operand bytes. Re-derive against v7x's 64 MiB
            # physical VMEM if D / SEQ / VOCAB / N_BLOCKS ever scale.
            vmem_limit_bytes=32 * 1024 * 1024),
    )(*operands)
    return logp[:, :VOCAB].reshape(B, S, VOCAB)           # drop the lane-padding columns


# ------------------------------ pure-JAX reference ----------------------------
def forward_ref(tokens, mask, params):
    x = params["emb"][tokens] * math.sqrt(N_UNITS)
    B, S, D = x.shape
    for p in params["blocks"]:
        h = layer_norm_spec(x, p["ln1_g"], p["ln1_b"])
        q, k, v = h @ p["wq"] + p["bq"], h @ p["wk"] + p["bk"], h @ p["wv"] + p["bv"]
        split = lambda t: t.reshape(B, S, N_HEADS, D_K).transpose(0, 2, 1, 3)
        qh, kh, vh = split(q), split(k), split(v)
        scores = qh @ kh.transpose(0, 1, 3, 2) / math.sqrt(D_K)
        scores = jnp.where(mask[:, None] == 0, -1e9, scores)
        attn = (jax.nn.softmax(scores, -1) @ vh).transpose(0, 2, 1, 3).reshape(B, S, D)
        x = x + attn @ p["wo"] + p["bo"]
        h2 = layer_norm_spec(x, p["ln2_g"], p["ln2_b"])
        x = x + jax.nn.relu(h2 @ p["w1"] + p["b1"]) @ p["w2"] + p["b2"]
    h = layer_norm_spec(x, params["lnf_g"], params["lnf_b"])
    return jax.nn.log_softmax(h @ params["wout"] + params["bout"], axis=-1)


# ------------------------------ deterministic init ----------------------------
def init_params(key):
    keys = iter(jax.random.split(key, 64))

    def lin(fan_in, shape):
        bound = 1.0 / math.sqrt(fan_in)
        return jax.random.uniform(next(keys), shape, jnp.float32, -bound, bound)

    params = {"emb": jax.random.normal(next(keys), (VOCAB, N_UNITS), jnp.float32)}
    blocks = []
    for _ in range(N_BLOCKS):
        p = {}
        for name in ("wq", "wk", "wv", "wo"):
            p[name] = lin(N_UNITS, (N_UNITS, N_UNITS))
        for name in ("bq", "bk", "bv", "bo"):
            p[name] = lin(N_UNITS, (N_UNITS,))
        p["ln1_g"] = jnp.ones((N_UNITS,), jnp.float32)
        p["ln1_b"] = jnp.zeros((N_UNITS,), jnp.float32)
        p["w1"] = lin(N_UNITS, (N_UNITS, D_FF))
        p["b1"] = lin(N_UNITS, (D_FF,))
        p["w2"] = lin(D_FF, (D_FF, N_UNITS))
        p["b2"] = lin(D_FF, (N_UNITS,))
        p["ln2_g"] = jnp.ones((N_UNITS,), jnp.float32)
        p["ln2_b"] = jnp.zeros((N_UNITS,), jnp.float32)
        blocks.append(p)
    params["blocks"] = blocks
    params["lnf_g"] = jnp.ones((N_UNITS,), jnp.float32)
    params["lnf_b"] = jnp.zeros((N_UNITS,), jnp.float32)
    params["wout"] = lin(N_UNITS, (N_UNITS, VOCAB))
    params["bout"] = lin(N_UNITS, (VOCAB,))
    return params


# ----------------------------------- main --------------------------------------
if __name__ == "__main__":
    key = jax.random.PRNGKey(0)
    pkey, tkey = jax.random.split(key)
    params = init_params(pkey)
    packed = pack_params(params)

    tokens = jax.random.randint(tkey, (BATCH, SEQ), 0, VOCAB, dtype=jnp.int32)
    causal = jnp.tril(jnp.ones((SEQ, SEQ), jnp.float32))        # subsequent-position mask
    mask = jnp.broadcast_to(causal, (BATCH, SEQ, SEQ))

    out = jax.block_until_ready(full_transformer_forward(tokens, mask, packed))
    assert out.shape == (BATCH, SEQ, VOCAB)

    ref = forward_ref(tokens, mask, params)
    err = float(jnp.max(jnp.abs(out - ref)))
    # Tolerance 5e-3 solely because the attention softmax normalization uses the EUP
    # approximate reciprocal (pl.reciprocal(..., approx=True)); dropping the attention
    # max-subtraction is mathematically shift-invariant and all other math (LayerNorm
    # with unbiased std + eps-on-std, matmuls, final log_softmax) is exact f32.
    assert err < 5e-3, f"mismatch vs reference: {err}"

    # TODO(synk): dropout inside the transformer stack is treated as identity
    # (eval mode / p=0) since it is stochastic and not part of the deterministic math.
    print("KERNEL_OK")
</pallas_src>

<mosaic_0001>
module attributes {stable_mosaic.version = 11 : i64} {
  func.func @fused_forward_kernel(%arg0: i32, %arg1: memref<16x32xf32, #tpu.memory_space<vmem>>, %arg2: memref<16x16xf32, #tpu.memory_space<vmem>>, %arg3: memref<2x64x224xf32, #tpu.memory_space<vmem>>, %arg4: memref<2x8x96xf32, #tpu.memory_space<vmem>>, %arg5: memref<40x128xf32, #tpu.memory_space<vmem>>, %arg6: memref<16x128xf32, #tpu.memory_space<vmem>>) attributes {dimension_semantics = [#tpu.dimension_semantics<arbitrary>], iteration_bounds = array<i64: 1>, scalar_prefetch = 0 : i64, scratch_operands = 0 : i64, tpu.core_type = #tpu.core_type<tc>, window_params = [{pipeline_mode = #tpu.pipeline_mode<synchronous>, transform_indices = @transform_0, window_bounds = array<i64: 16, 32>}, {pipeline_mode = #tpu.pipeline_mode<synchronous>, transform_indices = @transform_1, window_bounds = array<i64: 16, 16>}, {pipeline_mode = #tpu.pipeline_mode<synchronous>, transform_indices = @transform_2, window_bounds = array<i64: 2, 64, 224>}, {pipeline_mode = #tpu.pipeline_mode<synchronous>, transform_indices = @transform_3, window_bounds = array<i64: 2, 8, 96>}, {pipeline_mode = #tpu.pipeline_mode<synchronous>, transform_indices = @transform_4, window_bounds = array<i64: 40, 128>}, {pipeline_mode = #tpu.pipeline_mode<synchronous>, transform_indices = @transform_5, window_bounds = array<i64: 16, 128>}]} {
    %c0 = arith.constant 0 : index
    %c0_0 = arith.constant 0 : index
    %0 = vector.load %arg1[%c0, %c0_0] : memref<16x32xf32, #tpu.memory_space<vmem>>, vector<16x32xf32>
    %c0_1 = arith.constant 0 : index
    %c0_2 = arith.constant 0 : index
    %1 = vector.load %arg2[%c0_1, %c0_2] : memref<16x16xf32, #tpu.memory_space<vmem>>, vector<16x16xf32>
    %c0_3 = arith.constant 0 : index
    %c0_4 = arith.constant 0 : index
    %c0_5 = arith.constant 0 : index
    %2 = vector.load %arg3[%c0_3, %c0_4, %c0_5] : memref<2x64x224xf32, #tpu.memory_space<vmem>>, vector<1x64x224xf32>
    %3 = vector.shape_cast %2 : vector<1x64x224xf32> to vector<64x224xf32>
    %c0_6 = arith.constant 0 : index
    %c0_7 = arith.constant 0 : index
    %c0_8 = arith.constant 0 : index
    %4 = vector.load %arg4[%c0_6, %c0_7, %c0_8] : memref<2x8x96xf32, #tpu.memory_space<vmem>>, vector<1x8x96xf32>
    %5 = vector.shape_cast %4 : vector<1x8x96xf32> to vector<8x96xf32>
    %6 = vector.extract_strided_slice %3 {offsets = [0, 0], sizes = [32, 96], strides = [1, 1]} : vector<64x224xf32> to vector<32x96xf32>
    %7 = vector.extract_strided_slice %3 {offsets = [0, 96], sizes = [32, 32], strides = [1, 1]} : vector<64x224xf32> to vector<32x32xf32>
    %8 = vector.extract_strided_slice %3 {offsets = [0, 128], sizes = [32, 64], strides = [1, 1]} : vector<64x224xf32> to vector<32x64xf32>
    %9 = vector.extract_strided_slice %3 {offsets = [0, 192], sizes = [64, 32], strides = [1, 1]} : vector<64x224xf32> to vector<64x32xf32>
    %10 = vector.extract_strided_slice %5 {offsets = [0, 0], sizes = [1, 96], strides = [1, 1]} : vector<8x96xf32> to vector<1x96xf32>
    %11 = vector.extract_strided_slice %5 {offsets = [1, 0], sizes = [1, 32], strides = [1, 1]} : vector<8x96xf32> to vector<1x32xf32>
    %12 = vector.extract_strided_slice %5 {offsets = [2, 0], sizes = [1, 32], strides = [1, 1]} : vector<8x96xf32> to vector<1x32xf32>
    %13 = vector.extract_strided_slice %5 {offsets = [3, 0], sizes = [1, 32], strides = [1, 1]} : vector<8x96xf32> to vector<1x32xf32>
    %14 = vector.extract_strided_slice %5 {offsets = [4, 0], sizes = [1, 64], strides = [1, 1]} : vector<8x96xf32> to vector<1x64xf32>
    %15 = vector.extract_strided_slice %5 {offsets = [5, 0], sizes = [1, 32], strides = [1, 1]} : vector<8x96xf32> to vector<1x32xf32>
    %16 = vector.extract_strided_slice %5 {offsets = [6, 0], sizes = [1, 32], strides = [1, 1]} : vector<8x96xf32> to vector<1x32xf32>
    %17 = vector.extract_strided_slice %5 {offsets = [7, 0], sizes = [1, 32], strides = [1, 1]} : vector<8x96xf32> to vector<1x32xf32>
    %cst = arith.constant dense<0.000000e+00> : vector<16xf32>
    %18 = vector.multi_reduction <add>, %0, %cst [1] : vector<16x32xf32> to vector<16xf32>
    %19 = vector.shape_cast %18 : vector<16xf32> to vector<16x1xf32>
    %cst_9 = arith.constant 3.200000e+01 : f32
    %20 = vector.broadcast %cst_9 : f32 to vector<16x1xf32>
    %21 = arith.divf %19, %20 : vector<16x1xf32>
    %22 = vector.broadcast %21 : vector<16x1xf32> to vector<16x32xf32>
    %23 = arith.subf %0, %22 : vector<16x32xf32>
    %24 = arith.mulf %23, %23 : vector<16x32xf32>
    %cst_10 = arith.constant dense<0.000000e+00> : vector<16xf32>
    %25 = vector.multi_reduction <add>, %24, %cst_10 [1] : vector<16x32xf32> to vector<16xf32>
    %26 = vector.shape_cast %25 : vector<16xf32> to vector<16x1xf32>
    %cst_11 = arith.constant 0.0322580636 : f32
    %27 = vector.broadcast %cst_11 : f32 to vector<16x1xf32>
    %28 = arith.mulf %26, %27 : vector<16x1xf32>
    %29 = vector.broadcast %21 : vector<16x1xf32> to vector<16x32xf32>
    %30 = arith.subf %0, %29 : vector<16x32xf32>
    %31 = vector.broadcast %12 : vector<1x32xf32> to vector<16x32xf32>
    %32 = arith.mulf %31, %30 : vector<16x32xf32>
    %33 = math.sqrt %28 : vector<16x1xf32>
    %cst_12 = arith.constant 9.99999997E-7 : f32
    %34 = vector.broadcast %cst_12 : f32 to vector<16x1xf32>
    %35 = arith.addf %33, %34 : vector<16x1xf32>
    %36 = vector.broadcast %35 : vector<16x1xf32> to vector<16x32xf32>
    %37 = arith.divf %32, %36 : vector<16x32xf32>
    %38 = vector.broadcast %13 : vector<1x32xf32> to vector<16x32xf32>
    %39 = arith.addf %37, %38 : vector<16x32xf32>
    %cst_13 = arith.constant dense<0.000000e+00> : vector<16x96xf32>
    %40 = tpu.matmul %39, %6, %cst_13 {dimension_numbers = #tpu.dot_dimension_numbers<[1], [0], [0], [1], [0, 0, 1, 1], [], []>} : vector<16x32xf32>, vector<32x96xf32>, vector<16x96xf32> -> vector<16x96xf32>
    %41 = vector.broadcast %10 : vector<1x96xf32> to vector<16x96xf32>
    %42 = arith.addf %40, %41 : vector<16x96xf32>
    %43 = vector.extract_strided_slice %42 {offsets = [0, 0], sizes = [16, 8], strides = [1, 1]} : vector<16x96xf32> to vector<16x8xf32>
    %44 = vector.extract_strided_slice %42 {offsets = [0, 32], sizes = [16, 8], strides = [1, 1]} : vector<16x96xf32> to vector<16x8xf32>
    %45 = vector.extract_strided_slice %42 {offsets = [0, 64], sizes = [16, 8], strides = [1, 1]} : vector<16x96xf32> to vector<16x8xf32>
    %cst_14 = arith.constant dense<0.000000e+00> : vector<16x16xf32>
    %46 = tpu.matmul %43, %44, %cst_14 {dimension_numbers = #tpu.dot_dimension_numbers<[1], [1], [0], [0], [0, 0, 1, 0], [], []>} : vector<16x8xf32>, vector<16x8xf32>, vector<16x16xf32> -> vector<16x16xf32>
    %47 = arith.addf %46, %1 : vector<16x16xf32>
    %48 = math.exp %47 : vector<16x16xf32>
    %cst_15 = arith.constant dense<0.000000e+00> : vector<16xf32>
    %49 = vector.multi_reduction <add>, %48, %cst_15 [1] : vector<16x16xf32> to vector<16xf32>
    %50 = vector.shape_cast %49 : vector<16xf32> to vector<16x1xf32>
    %51 = tpu.reciprocal %50 {approx = true} : vector<16x1xf32> -> vector<16x1xf32>
    %52 = vector.broadcast %51 : vector<16x1xf32> to vector<16x16xf32>
    %53 = arith.mulf %48, %52 : vector<16x16xf32>
    %cst_16 = arith.constant dense<0.000000e+00> : vector<16x8xf32>
    %54 = tpu.matmul %53, %45, %cst_16 {dimension_numbers = #tpu.dot_dimension_numbers<[1], [0], [0], [1], [0, 0, 1, 1], [], []>} : vector<16x16xf32>, vector<16x8xf32>, vector<16x8xf32> -> vector<16x8xf32>
    %55 = vector.extract_strided_slice %42 {offsets = [0, 8], sizes = [16, 8], strides = [1, 1]} : vector<16x96xf32> to vector<16x8xf32>
    %56 = vector.extract_strided_slice %42 {offsets = [0, 40], sizes = [16, 8], strides = [1, 1]} : vector<16x96xf32> to vector<16x8xf32>
    %57 = vector.extract_strided_slice %42 {offsets = [0, 72], sizes = [16, 8], strides = [1, 1]} : vector<16x96xf32> to vector<16x8xf32>
    %cst_17 = arith.constant dense<0.000000e+00> : vector<16x16xf32>
    %58 = tpu.matmul %55, %56, %cst_17 {dimension_numbers = #tpu.dot_dimension_numbers<[1], [1], [0], [0], [0, 0, 1, 0], [], []>} : vector<16x8xf32>, vector<16x8xf32>, vector<16x16xf32> -> vector<16x16xf32>
    %59 = arith.addf %58, %1 : vector<16x16xf32>
    %60 = math.exp %59 : vector<16x16xf32>
    %cst_18 = arith.constant dense<0.000000e+00> : vector<16xf32>
    %61 = vector.multi_reduction <add>, %60, %cst_18 [1] : vector<16x16xf32> to vector<16xf32>
    %62 = vector.shape_cast %61 : vector<16xf32> to vector<16x1xf32>
    %63 = tpu.reciprocal %62 {approx = true} : vector<16x1xf32> -> vector<16x1xf32>
    %64 = vector.broadcast %63 : vector<16x1xf32> to vector<16x16xf32>
    %65 = arith.mulf %60, %64 : vector<16x16xf32>
    %cst_19 = arith.constant dense<0.000000e+00> : vector<16x8xf32>
    %66 = tpu.matmul %65, %57, %cst_19 {dimension_numbers = #tpu.dot_dimension_numbers<[1], [0], [0], [1], [0, 0, 1, 1], [], []>} : vector<16x16xf32>, vector<16x8xf32>, vector<16x8xf32> -> vector<16x8xf32>
    %67 = vector.extract_strided_slice %42 {offsets = [0, 16], sizes = [16, 8], strides = [1, 1]} : vector<16x96xf32> to vector<16x8xf32>
    %68 = vector.extract_strided_slice %42 {offsets = [0, 48], sizes = [16, 8], strides = [1, 1]} : vector<16x96xf32> to vector<16x8xf32>
    %69 = vector.extract_strided_slice %42 {offsets = [0, 80], sizes = [16, 8], strides = [1, 1]} : vector<16x96xf32> to vector<16x8xf32>
    %cst_20 = arith.constant dense<0.000000e+00> : vector<16x16xf32>
    %70 = tpu.matmul %67, %68, %cst_20 {dimension_numbers = #tpu.dot_dimension_numbers<[1], [1], [0], [0], [0, 0, 1, 0], [], []>} : vector<16x8xf32>, vector<16x8xf32>, vector<16x16xf32> -> vector<16x16xf32>
    %71 = arith.addf %70, %1 : vector<16x16xf32>
    %72 = math.exp %71 : vector<16x16xf32>
    %cst_21 = arith.constant dense<0.000000e+00> : vector<16xf32>
    %73 = vector.multi_reduction <add>, %72, %cst_21 [1] : vector<16x16xf32> to vector<16xf32>
    %74 = vector.shape_cast %73 : vector<16xf32> to vector<16x1xf32>
    %75 = tpu.reciprocal %74 {approx = true} : vector<16x1xf32> -> vector<16x1xf32>
    %76 = vector.broadcast %75 : vector<16x1xf32> to vector<16x16xf32>
    %77 = arith.mulf %72, %76 : vector<16x16xf32>
    %cst_22 = arith.constant dense<0.000000e+00> : vector<16x8xf32>
    %78 = tpu.matmul %77, %69, %cst_22 {dimension_numbers = #tpu.dot_dimension_numbers<[1], [0], [0], [1], [0, 0, 1, 1], [], []>} : vector<16x16xf32>, vector<16x8xf32>, vector<16x8xf32> -> vector<16x8xf32>
    %79 = vector.extract_strided_slice %42 {offsets = [0, 24], sizes = [16, 8], strides = [1, 1]} : vector<16x96xf32> to vector<16x8xf32>
    %80 = vector.extract_strided_slice %42 {offsets = [0, 56], sizes = [16, 8], strides = [1, 1]} : vector<16x96xf32> to vector<16x8xf32>
    %81 = vector.extract_strided_slice %42 {offsets = [0, 88], sizes = [16, 8], strides = [1, 1]} : vector<16x96xf32> to vector<16x8xf32>
    %cst_23 = arith.constant dense<0.000000e+00> : vector<16x16xf32>
    %82 = tpu.matmul %79, %80, %cst_23 {dimension_numbers = #tpu.dot_dimension_numbers<[1], [1], [0], [0], [0, 0, 1, 0], [], []>} : vector<16x8xf32>, vector<16x8xf32>, vector<16x16xf32> -> vector<16x16xf32>
    %83 = arith.addf %82, %1 : vector<16x16xf32>
    %84 = math.exp %83 : vector<16x16xf32>
    %cst_24 = arith.constant dense<0.000000e+00> : vector<16xf32>
    %85 = vector.multi_reduction <add>, %84, %cst_24 [1] : vector<16x16xf32> to vector<16xf32>
    %86 = vector.shape_cast %85 : vector<16xf32> to vector<16x1xf32>
    %87 = tpu.reciprocal %86 {approx = true} : vector<16x1xf32> -> vector<16x1xf32>
    %88 = vector.broadcast %87 : vector<16x1xf32> to vector<16x16xf32>
    %89 = arith.mulf %84, %88 : vector<16x16xf32>
    %cst_25 = arith.constant dense<0.000000e+00> : vector<16x8xf32>
    %90 = tpu.matmul %89, %81, %cst_25 {dimension_numbers = #tpu.dot_dimension_numbers<[1], [0], [0], [1], [0, 0, 1, 1], [], []>} : vector<16x16xf32>, vector<16x8xf32>, vector<16x8xf32> -> vector<16x8xf32>
    %91 = tpu.concatenate %54, %66, %78, %90 in 1 : vector<16x8xf32>, vector<16x8xf32>, vector<16x8xf32>, vector<16x8xf32> -> vector<16x32xf32>
    %cst_26 = arith.constant dense<0.000000e+00> : vector<16x32xf32>
    %92 = tpu.matmul %91, %7, %cst_26 {dimension_numbers = #tpu.dot_dimension_numbers<[1], [0], [0], [1], [0, 0, 1, 1], [], []>} : vector<16x32xf32>, vector<32x32xf32>, vector<16x32xf32> -> vector<16x32xf32>
    %93 = arith.addf %0, %92 : vector<16x32xf32>
    %94 = vector.broadcast %11 : vector<1x32xf32> to vector<16x32xf32>
    %95 = arith.addf %93, %94 : vector<16x32xf32>
    %cst_27 = arith.constant dense<0.000000e+00> : vector<16xf32>
    %96 = vector.multi_reduction <add>, %95, %cst_27 [1] : vector<16x32xf32> to vector<16xf32>
    %97 = vector.shape_cast %96 : vector<16xf32> to vector<16x1xf32>
    %cst_28 = arith.constant 3.200000e+01 : f32
    %98 = vector.broadcast %cst_28 : f32 to vector<16x1xf32>
    %99 = arith.divf %97, %98 : vector<16x1xf32>
    %100 = vector.broadcast %99 : vector<16x1xf32> to vector<16x32xf32>
    %101 = arith.subf %95, %100 : vector<16x32xf32>
    %102 = arith.mulf %101, %101 : vector<16x32xf32>
    %cst_29 = arith.constant dense<0.000000e+00> : vector<16xf32>
    %103 = vector.multi_reduction <add>, %102, %cst_29 [1] : vector<16x32xf32> to vector<16xf32>
    %104 = vector.shape_cast %103 : vector<16xf32> to vector<16x1xf32>
    %cst_30 = arith.constant 0.0322580636 : f32
    %105 = vector.broadcast %cst_30 : f32 to vector<16x1xf32>
    %106 = arith.mulf %104, %105 : vector<16x1xf32>
    %107 = vector.broadcast %99 : vector<16x1xf32> to vector<16x32xf32>
    %108 = arith.subf %95, %107 : vector<16x32xf32>
    %109 = vector.broadcast %16 : vector<1x32xf32> to vector<16x32xf32>
    %110 = arith.mulf %109, %108 : vector<16x32xf32>
    %111 = math.sqrt %106 : vector<16x1xf32>
    %cst_31 = arith.constant 9.99999997E-7 : f32
    %112 = vector.broadcast %cst_31 : f32 to vector<16x1xf32>
    %113 = arith.addf %111, %112 : vector<16x1xf32>
    %114 = vector.broadcast %113 : vector<16x1xf32> to vector<16x32xf32>
    %115 = arith.divf %110, %114 : vector<16x32xf32>
    %116 = vector.broadcast %17 : vector<1x32xf32> to vector<16x32xf32>
    %117 = arith.addf %115, %116 : vector<16x32xf32>
    %cst_32 = arith.constant dense<0.000000e+00> : vector<16x64xf32>
    %118 = tpu.matmul %117, %8, %cst_32 {dimension_numbers = #tpu.dot_dimension_numbers<[1], [0], [0], [1], [0, 0, 1, 1], [], []>} : vector<16x32xf32>, vector<32x64xf32>, vector<16x64xf32> -> vector<16x64xf32>
    %119 = vector.broadcast %14 : vector<1x64xf32> to vector<16x64xf32>
    %120 = arith.addf %118, %119 : vector<16x64xf32>
    %cst_33 = arith.constant 0.000000e+00 : f32
    %121 = vector.broadcast %cst_33 : f32 to vector<16x64xf32>
    %122 = arith.maximumf %120, %121 : vector<16x64xf32>
    %cst_34 = arith.constant dense<0.000000e+00> : vector<16x32xf32>
    %123 = tpu.matmul %122, %9, %cst_34 {dimension_numbers = #tpu.dot_dimension_numbers<[1], [0], [0], [1], [0, 0, 1, 1], [], []>} : vector<16x64xf32>, vector<64x32xf32>, vector<16x32xf32> -> vector<16x32xf32>
    %124 = arith.addf %95, %123 : vector<16x32xf32>
    %125 = vector.broadcast %15 : vector<1x32xf32> to vector<16x32xf32>
    %126 = arith.addf %124, %125 : vector<16x32xf32>
    %c1 = arith.constant 1 : index
    %c0_35 = arith.constant 0 : index
    %c0_36 = arith.constant 0 : index
    %127 = vector.load %arg3[%c1, %c0_35, %c0_36] : memref<2x64x224xf32, #tpu.memory_space<vmem>>, vector<1x64x224xf32>
    %128 = vector.shape_cast %127 : vector<1x64x224xf32> to vector<64x224xf32>
    %c1_37 = arith.constant 1 : index
    %c0_38 = arith.constant 0 : index
    %c0_39 = arith.constant 0 : index
    %129 = vector.load %arg4[%c1_37, %c0_38, %c0_39] : memref<2x8x96xf32, #tpu.memory_space<vmem>>, vector<1x8x96xf32>
    %130 = vector.shape_cast %129 : vector<1x8x96xf32> to vector<8x96xf32>
    %131 = vector.extract_strided_slice %128 {offsets = [0, 0], sizes = [32, 96], strides = [1, 1]} : vector<64x224xf32> to vector<32x96xf32>
    %132 = vector.extract_strided_slice %128 {offsets = [0, 96], sizes = [32, 32], strides = [1, 1]} : vector<64x224xf32> to vector<32x32xf32>
    %133 = vector.extract_strided_slice %128 {offsets = [0, 128], sizes = [32, 64], strides = [1, 1]} : vector<64x224xf32> to vector<32x64xf32>
    %134 = vector.extract_strided_slice %128 {offsets = [0, 192], sizes = [64, 32], strides = [1, 1]} : vector<64x224xf32> to vector<64x32xf32>
    %135 = vector.extract_strided_slice %130 {offsets = [0, 0], sizes = [1, 96], strides = [1, 1]} : vector<8x96xf32> to vector<1x96xf32>
    %136 = vector.extract_strided_slice %130 {offsets = [1, 0], sizes = [1, 32], strides = [1, 1]} : vector<8x96xf32> to vector<1x32xf32>
    %137 = vector.extract_strided_slice %130 {offsets = [2, 0], sizes = [1, 32], strides = [1, 1]} : vector<8x96xf32> to vector<1x32xf32>
    %138 = vector.extract_strided_slice %130 {offsets = [3, 0], sizes = [1, 32], strides = [1, 1]} : vector<8x96xf32> to vector<1x32xf32>
    %139 = vector.extract_strided_slice %130 {offsets = [4, 0], sizes = [1, 64], strides = [1, 1]} : vector<8x96xf32> to vector<1x64xf32>
    %140 = vector.extract_strided_slice %130 {offsets = [5, 0], sizes = [1, 32], strides = [1, 1]} : vector<8x96xf32> to vector<1x32xf32>
    %141 = vector.extract_strided_slice %130 {offsets = [6, 0], sizes = [1, 32], strides = [1, 1]} : vector<8x96xf32> to vector<1x32xf32>
    %142 = vector.extract_strided_slice %130 {offsets = [7, 0], sizes = [1, 32], strides = [1, 1]} : vector<8x96xf32> to vector<1x32xf32>
    %cst_40 = arith.constant dense<0.000000e+00> : vector<16xf32>
    %143 = vector.multi_reduction <add>, %126, %cst_40 [1] : vector<16x32xf32> to vector<16xf32>
    %144 = vector.shape_cast %143 : vector<16xf32> to vector<16x1xf32>
    %cst_41 = arith.constant 3.200000e+01 : f32
    %145 = vector.broadcast %cst_41 : f32 to vector<16x1xf32>
    %146 = arith.divf %144, %145 : vector<16x1xf32>
    %147 = vector.broadcast %146 : vector<16x1xf32> to vector<16x32xf32>
    %148 = arith.subf %126, %147 : vector<16x32xf32>
    %149 = arith.mulf %148, %148 : vector<16x32xf32>
    %cst_42 = arith.constant dense<0.000000e+00> : vector<16xf32>
    %150 = vector.multi_reduction <add>, %149, %cst_42 [1] : vector<16x32xf32> to vector<16xf32>
    %151 = vector.shape_cast %150 : vector<16xf32> to vector<16x1xf32>
    %cst_43 = arith.constant 0.0322580636 : f32
    %152 = vector.broadcast %cst_43 : f32 to vector<16x1xf32>
    %153 = arith.mulf %151, %152 : vector<16x1xf32>
    %154 = vector.broadcast %146 : vector<16x1xf32> to vector<16x32xf32>
    %155 = arith.subf %126, %154 : vector<16x32xf32>
    %156 = vector.broadcast %137 : vector<1x32xf32> to vector<16x32xf32>
    %157 = arith.mulf %156, %155 : vector<16x32xf32>
    %158 = math.sqrt %153 : vector<16x1xf32>
    %cst_44 = arith.constant 9.99999997E-7 : f32
    %159 = vector.broadcast %cst_44 : f32 to vector<16x1xf32>
    %160 = arith.addf %158, %159 : vector<16x1xf32>
    %161 = vector.broadcast %160 : vector<16x1xf32> to vector<16x32xf32>
    %162 = arith.divf %157, %161 : vector<16x32xf32>
    %163 = vector.broadcast %138 : vector<1x32xf32> to vector<16x32xf32>
    %164 = arith.addf %162, %163 : vector<16x32xf32>
    %cst_45 = arith.constant dense<0.000000e+00> : vector<16x96xf32>
    %165 = tpu.matmul %164, %131, %cst_45 {dimension_numbers = #tpu.dot_dimension_numbers<[1], [0], [0], [1], [0, 0, 1, 1], [], []>} : vector<16x32xf32>, vector<32x96xf32>, vector<16x96xf32> -> vector<16x96xf32>
    %166 = vector.broadcast %135 : vector<1x96xf32> to vector<16x96xf32>
    %167 = arith.addf %165, %166 : vector<16x96xf32>
    %168 = vector.extract_strided_slice %167 {offsets = [0, 0], sizes = [16, 8], strides = [1, 1]} : vector<16x96xf32> to vector<16x8xf32>
    %169 = vector.extract_strided_slice %167 {offsets = [0, 32], sizes = [16, 8], strides = [1, 1]} : vector<16x96xf32> to vector<16x8xf32>
    %170 = vector.extract_strided_slice %167 {offsets = [0, 64], sizes = [16, 8], strides = [1, 1]} : vector<16x96xf32> to vector<16x8xf32>
    %cst_46 = arith.constant dense<0.000000e+00> : vector<16x16xf32>
    %171 = tpu.matmul %168, %169, %cst_46 {dimension_numbers = #tpu.dot_dimension_numbers<[1], [1], [0], [0], [0, 0, 1, 0], [], []>} : vector<16x8xf32>, vector<16x8xf32>, vector<16x16xf32> -> vector<16x16xf32>
    %172 = arith.addf %171, %1 : vector<16x16xf32>
    %173 = math.exp %172 : vector<16x16xf32>
    %cst_47 = arith.constant dense<0.000000e+00> : vector<16xf32>
    %174 = vector.multi_reduction <add>, %173, %cst_47 [1] : vector<16x16xf32> to vector<16xf32>
    %175 = vector.shape_cast %174 : vector<16xf32> to vector<16x1xf32>
    %176 = tpu.reciprocal %175 {approx = true} : vector<16x1xf32> -> vector<16x1xf32>
    %177 = vector.broadcast %176 : vector<16x1xf32> to vector<16x16xf32>
    %178 = arith.mulf %173, %177 : vector<16x16xf32>
    %cst_48 = arith.constant dense<0.000000e+00> : vector<16x8xf32>
    %179 = tpu.matmul %178, %170, %cst_48 {dimension_numbers = #tpu.dot_dimension_numbers<[1], [0], [0], [1], [0, 0, 1, 1], [], []>} : vector<16x16xf32>, vector<16x8xf32>, vector<16x8xf32> -> vector<16x8xf32>
    %180 = vector.extract_strided_slice %167 {offsets = [0, 8], sizes = [16, 8], strides = [1, 1]} : vector<16x96xf32> to vector<16x8xf32>
    %181 = vector.extract_strided_slice %167 {offsets = [0, 40], sizes = [16, 8], strides = [1, 1]} : vector<16x96xf32> to vector<16x8xf32>
    %182 = vector.extract_strided_slice %167 {offsets = [0, 72], sizes = [16, 8], strides = [1, 1]} : vector<16x96xf32> to vector<16x8xf32>
    %cst_49 = arith.constant dense<0.000000e+00> : vector<16x16xf32>
    %183 = tpu.matmul %180, %181, %cst_49 {dimension_numbers = #tpu.dot_dimension_numbers<[1], [1], [0], [0], [0, 0, 1, 0], [], []>} : vector<16x8xf32>, vector<16x8xf32>, vector<16x16xf32> -> vector<16x16xf32>
    %184 = arith.addf %183, %1 : vector<16x16xf32>
    %185 = math.exp %184 : vector<16x16xf32>
    %cst_50 = arith.constant dense<0.000000e+00> : vector<16xf32>
    %186 = vector.multi_reduction <add>, %185, %cst_50 [1] : vector<16x16xf32> to vector<16xf32>
    %187 = vector.shape_cast %186 : vector<16xf32> to vector<16x1xf32>
    %188 = tpu.reciprocal %187 {approx = true} : vector<16x1xf32> -> vector<16x1xf32>
    %189 = vector.broadcast %188 : vector<16x1xf32> to vector<16x16xf32>
    %190 = arith.mulf %185, %189 : vector<16x16xf32>
    %cst_51 = arith.constant dense<0.000000e+00> : vector<16x8xf32>
    %191 = tpu.matmul %190, %182, %cst_51 {dimension_numbers = #tpu.dot_dimension_numbers<[1], [0], [0], [1], [0, 0, 1, 1], [], []>} : vector<16x16xf32>, vector<16x8xf32>, vector<16x8xf32> -> vector<16x8xf32>
    %192 = vector.extract_strided_slice %167 {offsets = [0, 16], sizes = [16, 8], strides = [1, 1]} : vector<16x96xf32> to vector<16x8xf32>
    %193 = vector.extract_strided_slice %167 {offsets = [0, 48], sizes = [16, 8], strides = [1, 1]} : vector<16x96xf32> to vector<16x8xf32>
    %194 = vector.extract_strided_slice %167 {offsets = [0, 80], sizes = [16, 8], strides = [1, 1]} : vector<16x96xf32> to vector<16x8xf32>
    %cst_52 = arith.constant dense<0.000000e+00> : vector<16x16xf32>
    %195 = tpu.matmul %192, %193, %cst_52 {dimension_numbers = #tpu.dot_dimension_numbers<[1], [1], [0], [0], [0, 0, 1, 0], [], []>} : vector<16x8xf32>, vector<16x8xf32>, vector<16x16xf32> -> vector<16x16xf32>
    %196 = arith.addf %195, %1 : vector<16x16xf32>
    %197 = math.exp %196 : vector<16x16xf32>
    %cst_53 = arith.constant dense<0.000000e+00> : vector<16xf32>
    %198 = vector.multi_reduction <add>, %197, %cst_53 [1] : vector<16x16xf32> to vector<16xf32>
    %199 = vector.shape_cast %198 : vector<16xf32> to vector<16x1xf32>
    %200 = tpu.reciprocal %199 {approx = true} : vector<16x1xf32> -> vector<16x1xf32>
    %201 = vector.broadcast %200 : vector<16x1xf32> to vector<16x16xf32>
    %202 = arith.mulf %197, %201 : vector<16x16xf32>
    %cst_54 = arith.constant dense<0.000000e+00> : vector<16x8xf32>
    %203 = tpu.matmul %202, %194, %cst_54 {dimension_numbers = #tpu.dot_dimension_numbers<[1], [0], [0], [1], [0, 0, 1, 1], [], []>} : vector<16x16xf32>, vector<16x8xf32>, vector<16x8xf32> -> vector<16x8xf32>
    %204 = vector.extract_strided_slice %167 {offsets = [0, 24], sizes = [16, 8], strides = [1, 1]} : vector<16x96xf32> to vector<16x8xf32>
    %205 = vector.extract_strided_slice %167 {offsets = [0, 56], sizes = [16, 8], strides = [1, 1]} : vector<16x96xf32> to vector<16x8xf32>
    %206 = vector.extract_strided_slice %167 {offsets = [0, 88], sizes = [16, 8], strides = [1, 1]} : vector<16x96xf32> to vector<16x8xf32>
    %cst_55 = arith.constant dense<0.000000e+00> : vector<16x16xf32>
    %207 = tpu.matmul %204, %205, %cst_55 {dimension_numbers = #tpu.dot_dimension_numbers<[1], [1], [0], [0], [0, 0, 1, 0], [], []>} : vector<16x8xf32>, vector<16x8xf32>, vector<16x16xf32> -> vector<16x16xf32>
    %208 = arith.addf %207, %1 : vector<16x16xf32>
    %209 = math.exp %208 : vector<16x16xf32>
    %cst_56 = arith.constant dense<0.000000e+00> : vector<16xf32>
    %210 = vector.multi_reduction <add>, %209, %cst_56 [1] : vector<16x16xf32> to vector<16xf32>
    %211 = vector.shape_cast %210 : vector<16xf32> to vector<16x1xf32>
    %212 = tpu.reciprocal %211 {approx = true} : vector<16x1xf32> -> vector<16x1xf32>
    %213 = vector.broadcast %212 : vector<16x1xf32> to vector<16x16xf32>
    %214 = arith.mulf %209, %213 : vector<16x16xf32>
    %cst_57 = arith.constant dense<0.000000e+00> : vector<16x8xf32>
    %215 = tpu.matmul %214, %206, %cst_57 {dimension_numbers = #tpu.dot_dimension_numbers<[1], [0], [0], [1], [0, 0, 1, 1], [], []>} : vector<16x16xf32>, vector<16x8xf32>, vector<16x8xf32> -> vector<16x8xf32>
    %216 = tpu.concatenate %179, %191, %203, %215 in 1 : vector<16x8xf32>, vector<16x8xf32>, vector<16x8xf32>, vector<16x8xf32> -> vector<16x32xf32>
    %cst_58 = arith.constant dense<0.000000e+00> : vector<16x32xf32>
    %217 = tpu.matmul %216, %132, %cst_58 {dimension_numbers = #tpu.dot_dimension_numbers<[1], [0], [0], [1], [0, 0, 1, 1], [], []>} : vector<16x32xf32>, vector<32x32xf32>, vector<16x32xf32> -> vector<16x32xf32>
    %218 = arith.addf %126, %217 : vector<16x32xf32>
    %219 = vector.broadcast %136 : vector<1x32xf32> to vector<16x32xf32>
    %220 = arith.addf %218, %219 : vector<16x32xf32>
    %cst_59 = arith.constant dense<0.000000e+00> : vector<16xf32>
    %221 = vector.multi_reduction <add>, %220, %cst_59 [1] : vector<16x32xf32> to vector<16xf32>
    %222 = vector.shape_cast %221 : vector<16xf32> to vector<16x1xf32>
    %cst_60 = arith.constant 3.200000e+01 : f32
    %223 = vector.broadcast %cst_60 : f32 to vector<16x1xf32>
    %224 = arith.divf %222, %223 : vector<16x1xf32>
    %225 = vector.broadcast %224 : vector<16x1xf32> to vector<16x32xf32>
    %226 = arith.subf %220, %225 : vector<16x32xf32>
    %227 = arith.mulf %226, %226 : vector<16x32xf32>
    %cst_61 = arith.constant dense<0.000000e+00> : vector<16xf32>
    %228 = vector.multi_reduction <add>, %227, %cst_61 [1] : vector<16x32xf32> to vector<16xf32>
    %229 = vector.shape_cast %228 : vector<16xf32> to vector<16x1xf32>
    %cst_62 = arith.constant 0.0322580636 : f32
    %230 = vector.broadcast %cst_62 : f32 to vector<16x1xf32>
    %231 = arith.mulf %229, %230 : vector<16x1xf32>
    %232 = vector.broadcast %224 : vector<16x1xf32> to vector<16x32xf32>
    %233 = arith.subf %220, %232 : vector<16x32xf32>
    %234 = vector.broadcast %141 : vector<1x32xf32> to vector<16x32xf32>
    %235 = arith.mulf %234, %233 : vector<16x32xf32>
    %236 = math.sqrt %231 : vector<16x1xf32>
    %cst_63 = arith.constant 9.99999997E-7 : f32
    %237 = vector.broadcast %cst_63 : f32 to vector<16x1xf32>
    %238 = arith.addf %236, %237 : vector<16x1xf32>
    %239 = vector.broadcast %238 : vector<16x1xf32> to vector<16x32xf32>
    %240 = arith.divf %235, %239 : vector<16x32xf32>
    %241 = vector.broadcast %142 : vector<1x32xf32> to vector<16x32xf32>
    %242 = arith.addf %240, %241 : vector<16x32xf32>
    %cst_64 = arith.constant dense<0.000000e+00> : vector<16x64xf32>
    %243 = tpu.matmul %242, %133, %cst_64 {dimension_numbers = #tpu.dot_dimension_numbers<[1], [0], [0], [1], [0, 0, 1, 1], [], []>} : vector<16x32xf32>, vector<32x64xf32>, vector<16x64xf32> -> vector<16x64xf32>
    %244 = vector.broadcast %139 : vector<1x64xf32> to vector<16x64xf32>
    %245 = arith.addf %243, %244 : vector<16x64xf32>
    %cst_65 = arith.constant 0.000000e+00 : f32
    %246 = vector.broadcast %cst_65 : f32 to vector<16x64xf32>
    %247 = arith.maximumf %245, %246 : vector<16x64xf32>
    %cst_66 = arith.constant dense<0.000000e+00> : vector<16x32xf32>
    %248 = tpu.matmul %247, %134, %cst_66 {dimension_numbers = #tpu.dot_dimension_numbers<[1], [0], [0], [1], [0, 0, 1, 1], [], []>} : vector<16x64xf32>, vector<64x32xf32>, vector<16x32xf32> -> vector<16x32xf32>
    %249 = arith.addf %220, %248 : vector<16x32xf32>
    %250 = vector.broadcast %140 : vector<1x32xf32> to vector<16x32xf32>
    %251 = arith.addf %249, %250 : vector<16x32xf32>
    %c0_67 = arith.constant 0 : index
    %c0_68 = arith.constant 0 : index
    %252 = vector.load %arg5[%c0_67, %c0_68] : memref<40x128xf32, #tpu.memory_space<vmem>>, vector<40x128xf32>
    %253 = vector.extract_strided_slice %252 {offsets = [0, 0], sizes = [32, 128], strides = [1, 1]} : vector<40x128xf32> to vector<32x128xf32>
    %254 = vector.extract_strided_slice %252 {offsets = [32, 0], sizes = [1, 128], strides = [1, 1]} : vector<40x128xf32> to vector<1x128xf32>
    %255 = vector.extract_strided_slice %252 {offsets = [33, 0], sizes = [1, 32], strides = [1, 1]} : vector<40x128xf32> to vector<1x32xf32>
    %256 = vector.extract_strided_slice %252 {offsets = [34, 0], sizes = [1, 32], strides = [1, 1]} : vector<40x128xf32> to vector<1x32xf32>
    %cst_69 = arith.constant dense<0.000000e+00> : vector<16xf32>
    %257 = vector.multi_reduction <add>, %251, %cst_69 [1] : vector<16x32xf32> to vector<16xf32>
    %258 = vector.shape_cast %257 : vector<16xf32> to vector<16x1xf32>
    %cst_70 = arith.constant 3.200000e+01 : f32
    %259 = vector.broadcast %cst_70 : f32 to vector<16x1xf32>
    %260 = arith.divf %258, %259 : vector<16x1xf32>
    %261 = vector.broadcast %260 : vector<16x1xf32> to vector<16x32xf32>
    %262 = arith.subf %251, %261 : vector<16x32xf32>
    %263 = arith.mulf %262, %262 : vector<16x32xf32>
    %cst_71 = arith.constant dense<0.000000e+00> : vector<16xf32>
    %264 = vector.multi_reduction <add>, %263, %cst_71 [1] : vector<16x32xf32> to vector<16xf32>
    %265 = vector.shape_cast %264 : vector<16xf32> to vector<16x1xf32>
    %cst_72 = arith.constant 0.0322580636 : f32
    %266 = vector.broadcast %cst_72 : f32 to vector<16x1xf32>
    %267 = arith.mulf %265, %266 : vector<16x1xf32>
    %268 = vector.broadcast %260 : vector<16x1xf32> to vector<16x32xf32>
    %269 = arith.subf %251, %268 : vector<16x32xf32>
    %270 = vector.broadcast %255 : vector<1x32xf32> to vector<16x32xf32>
    %271 = arith.mulf %270, %269 : vector<16x32xf32>
    %272 = math.sqrt %267 : vector<16x1xf32>
    %cst_73 = arith.constant 9.99999997E-7 : f32
    %273 = vector.broadcast %cst_73 : f32 to vector<16x1xf32>
    %274 = arith.addf %272, %273 : vector<16x1xf32>
    %275 = vector.broadcast %274 : vector<16x1xf32> to vector<16x32xf32>
    %276 = arith.divf %271, %275 : vector<16x32xf32>
    %277 = vector.broadcast %256 : vector<1x32xf32> to vector<16x32xf32>
    %278 = arith.addf %276, %277 : vector<16x32xf32>
    %cst_74 = arith.constant dense<0.000000e+00> : vector<16x128xf32>
    %279 = tpu.matmul %278, %253, %cst_74 {dimension_numbers = #tpu.dot_dimension_numbers<[1], [0], [0], [1], [0, 0, 1, 1], [], []>} : vector<16x32xf32>, vector<32x128xf32>, vector<16x128xf32> -> vector<16x128xf32>
    %280 = vector.broadcast %254 : vector<1x128xf32> to vector<16x128xf32>
    %281 = arith.addf %279, %280 : vector<16x128xf32>
    %cst_75 = arith.constant dense<0xFF800000> : vector<16xf32>
    %282 = vector.multi_reduction <maximumf>, %281, %cst_75 [1] : vector<16x128xf32> to vector<16xf32>
    %283 = vector.shape_cast %282 : vector<16xf32> to vector<16x1xf32>
    %284 = vector.broadcast %283 : vector<16x1xf32> to vector<16x128xf32>
    %285 = arith.subf %281, %284 : vector<16x128xf32>
    %286 = math.exp %285 : vector<16x128xf32>
    %cst_76 = arith.constant dense<0.000000e+00> : vector<16xf32>
    %287 = vector.multi_reduction <add>, %286, %cst_76 [1] : vector<16x128xf32> to vector<16xf32>
    %288 = vector.shape_cast %287 : vector<16xf32> to vector<16x1xf32>
    %289 = math.log %288 : vector<16x1xf32>
    %290 = vector.broadcast %289 : vector<16x1xf32> to vector<16x128xf32>
    %291 = arith.subf %285, %290 : vector<16x128xf32>
    %c0_77 = arith.constant 0 : index
    %c0_78 = arith.constant 0 : index
    %292 = vector.load %arg6[%c0_77, %c0_78] : memref<16x128xf32, #tpu.memory_space<vmem>>, vector<16x128xf32>
    tpu.vector_store %arg6[%c0_77, %c0_78], %291 {strides = array<i32>} : memref<16x128xf32, #tpu.memory_space<vmem>>, vector<16x128xf32>,
    return
  }
  func.func @transform_0(%arg0: i32) -> (i32, i32) {
    %c0_i32 = arith.constant 0 : i32
    %c0_i32_0 = arith.constant 0 : i32
    %c0_i32_1 = arith.constant 0 : i32
    return %c0_i32, %c0_i32_0 : i32, i32
  }
  func.func @transform_1(%arg0: i32) -> (i32, i32) {
    %c0_i32 = arith.constant 0 : i32
    %c0_i32_0 = arith.constant 0 : i32
    %c0_i32_1 = arith.constant 0 : i32
    return %c0_i32, %c0_i32_0 : i32, i32
  }
  func.func @transform_2(%arg0: i32) -> (i32, i32, i32) {
    %c0_i32 = arith.constant 0 : i32
    %c0_i32_0 = arith.constant 0 : i32
    %c0_i32_1 = arith.constant 0 : i32
    %c0_i32_2 = arith.constant 0 : i32
    return %c0_i32, %c0_i32_0, %c0_i32_1 : i32, i32, i32
  }
  func.func @transform_3(%arg0: i32) -> (i32, i32, i32) {
    %c0_i32 = arith.constant 0 : i32
    %c0_i32_0 = arith.constant 0 : i32
    %c0_i32_1 = arith.constant 0 : i32
    %c0_i32_2 = arith.constant 0 : i32
    return %c0_i32, %c0_i32_0, %c0_i32_1 : i32, i32, i32
  }
  func.func @transform_4(%arg0: i32) -> (i32, i32) {
    %c0_i32 = arith.constant 0 : i32
    %c0_i32_0 = arith.constant 0 : i32
    %c0_i32_1 = arith.constant 0 : i32
    return %c0_i32, %c0_i32_0 : i32, i32
  }
  func.func @transform_5(%arg0: i32) -> (i32, i32) {
    %c0_i32 = arith.constant 0 : i32
    %c0_i32_0 = arith.constant 0 : i32
    %c0_i32_1 = arith.constant 0 : i32
    return %c0_i32, %c0_i32_0 : i32, i32
  }
}

</mosaic_0001>

<bundles_post_ra>
// kernel: full_transformer_forward.1
= control target key start
LH: loop header
LB: loop body
LE: loop exit
PB: predicated region body
PF: predicated region fallthrough
CT: control target
= control target key end

     0   :  { %vm37_vm0 = vcmask 261120   ;;  %v59_v26 = vlaneseq  ;;  %vm182_vm5 = vcmask 64512   ;;  %s3691_s6 = smov 64   ;;  %s3692_s7 = smov 96   ;;  %vm270_vm7 = vcmask 130048   ;;  %s4279_s0 = inlined_call_operand.vmem [shape: f32[16,32], index: 0, kind: input, shape index: {}]   ;;  %s4280_s2 = inlined_call_operand.vmem [shape: f32[2,64,224], index: 2, kind: input, shape index: {}]   ;;  %s4281_s3 = inlined_call_operand.vmem [shape: f32[2,8,96], index: 3, kind: input, shape index: {}]   ;;  %s4282_s1 = inlined_call_operand.vmem [shape: f32[16,16], index: 1, kind: input, shape index: {}]   ;;  %s4283_s4 = inlined_call_operand.vmem [shape: f32[40,128], index: 4, kind: input, shape index: {}]   ;;  %s4284_s5 = inlined_call_operand.vmem [shape: f32[16,128], index: 5, kind: output, shape index: {}]  }
   0x1   :  { %v3739_v0 = vld [vmem:[%s4279_s0] sm:$0xff]  ;;  %v3744_v1 = vld [vmem:[%s4279_s0 + $0x8] sm:$0xff]  ;;  %v3762_v15 = vld [vmem:[%s4280_s2 + $0x10] sm:$0xff]  ;;  %s3693_s8 = smov 88   ;;  %s3694_s9 = smov 120   ;;  %vm972_vm8 = vcmask 195584  }
   0x2   :  { %v38_v2 = vsel %vm37_vm0, %v3739_v0, 0.0  ;;  %v41_v3 = vsel %vm37_vm0, %v3744_v1, 0.0  ;;  %v3757_v14 = vld [vmem:[%s4280_s2] sm:$0xff]  ;;  %v3776_v19 = vld [vmem:[%s4280_s2 + $0x30] sm:$0xff]  ;;  %v3780_v31 = vshrl.u32 %v59_v26, 7  ;;  %vm3823_vm6 = vmpackc.low %vm182_vm5, %vm182_vm5  ;;  %s3695_s14 = smov 80  }
   0x3   :  { %39 = vadd.xlane.f32.xlu0 %v38_v2  ;;  %v3767_v16 = vld [vmem:[%s4280_s2 + $0x20] sm:$0xff]  ;;  %v3477_v17 = vpack.i.bf16 %v3762_v15, %v3757_v14  ;;  %v3254_v18 = vpack.c.bf16 %v3762_v15, %v3757_v14  ;;  %s3696_s15 = smov 112   ;;  %s3697_s16 = smov 56   ;;  %vm1251_vm13 = vcmask 523264  }
   0x4   :  { %v3258_v20 = vpack.c.bf16 %v3776_v19, %v3767_v16  ;;  %v3783_v37 = vsub.s32 2, %v3780_v31  ;;  %v3788_v39 = vld [vmem:[%s4281_s3] sm:$0xff]  ;;  %v87_v42 = vsub.s32 3, %v3780_v31  ;;  %v3799_v52 = vsub.s32 0, %v3780_v31  ;;  %s3698_s17 = smov 72   ;;  %s3699_s18 = smov 104  }
   0x5   :  { %3255 = vmatprep.subr.bf16.mxu0 %v3254_v18  ;;  %s3700_s19 = smov 48   ;;  %s3701_s20 = smov 32  }
   0x6   :  { %3257 = vmatpush3.bf16.msra.mxu0 %v3254_v18  ;;  %v62_v41 = vrot.slane %v3788_v39, %v3783_v37  ;;  %v88_v44 = vrot.slane %v3788_v39, %v87_v42  ;;  %v94_v53 = vrot.slane %v3788_v39, %v3799_v52  ;;  %s3702_s21 = smov 40   ;;  %s3703_s0 = smov 8  }
   0x7   :  { %42 = vadd.xlane.f32.xlu0 %v41_v3  ;;  %3259 = vmatprep.subr.bf16.mxu0 %v3258_v20  ;;  %s3704_s22 = smov 16   ;;  %s3705_s23 = smov 24  }
   0xa   :  { %3261 = vmatpush3.bf16.msra.mxu0 %v3258_v20 }
  0x90   :  { %v40_v4 = vpop.xlane.xlu0 %39 }
  0x91   :  { %v45_v5 = vmul.f32 0.03125, %v40_v4 }
  0x93   :  { %v47_v6 = vsub.f32 %v3739_v0, %v45_v5 }
  0x94   :  { %v43_v7 = vpop.xlane.xlu0 %42 }
  0x95   :  { %v46_v8 = vmul.f32 0.03125, %v43_v7  ;;  %v49_v9 = vmul.f32 %v47_v6, %v47_v6  ;;  %v63_v43 = vmul.f32 %v62_v41, %v47_v6 }
  0x97   :  { %v48_v10 = vsub.f32 %v3744_v1, %v46_v8  ;;  %v51_v11 = vsel %vm37_vm0, %v49_v9, 0.0 }
  0x98   :  { %52 = vadd.xlane.f32.xlu1 %v51_v11  ;;  %v3843_v11 = vld [vmem:[%s4282_s1] sm:$0xff] }
  0x99   :  { %v50_v12 = vmul.f32 %v48_v10, %v48_v10  ;;  %v64_v47 = vmul.f32 %v62_v41, %v48_v10  ;;  %v3838_v10 = vld [vmem:[%s4282_s1 + $0x8] sm:$0xff] }
  0x9b   :  { %v54_v13 = vsel %vm37_vm0, %v50_v12, 0.0 }
  0x9c   :  { %55 = vadd.xlane.f32.xlu1 %v54_v13 }
 0x125   :  { %v53_v21 = vpop.xlane.xlu1 %52 }
 0x126   :  { %v57_v22 = vmul.f32 0.032258064, %v53_v21 }
 0x128   :  { %3577 = vrsqrt.f32 %v57_v22  ;;  %vm67_vm1 = vcmp.eq.f32.partialorder %v57_v22, inf  ;;  %v70_v28 = vand.u32 2147483648, %v57_v22  ;;  %vm69_vm2 = vcmp.eq.f32.partialorder %v57_v22, 0.0 }
 0x129   :  { %v56_v23 = vpop.xlane.xlu1 %55 }
 0x12a   :  { %v58_v24 = vmul.f32 0.032258064, %v56_v23 }
 0x12c   :  { %3579 = vrsqrt.f32 %v58_v24  ;;  %vm74_vm3 = vcmp.eq.f32.partialorder %v58_v24, inf  ;;  %v77_v35 = vand.u32 2147483648, %v58_v24  ;;  %vm76_vm4 = vcmp.eq.f32.partialorder %v58_v24, 0.0 }
 0x132   :  { %v3578_v25 = vpop.eup %3577 }
 0x133   :  { %v66_v27 = vmul.f32 %v3578_v25, %v57_v22 }
 0x135   :  { %v68_v29 = vsel %vm67_vm1, %v57_v22, %v66_v27 }
 0x136   :  { %v3580_v30 = vpop.eup %3579  ;;  %v71_v32 = vsel %vm69_vm2, %v70_v28, %v68_v29 }
 0x137   :  { %v73_v33 = vmul.f32 %v3580_v30, %v58_v24  ;;  %v79_v34 = vadd.f32 1e-06, %v71_v32 }
 0x139   :  { %v75_v36 = vsel %vm74_vm3, %v58_v24, %v73_v33  ;;  %3581 = vrcp.f32 %v79_v34 }
 0x13a   :  { %v78_v38 = vsel %vm76_vm4, %v77_v35, %v75_v36 }
 0x13b   :  { %v80_v40 = vadd.f32 1e-06, %v78_v38 }
 0x13d   :  { %3583 = vrcp.f32 %v80_v40 }
 0x143   :  { %v3582_v45 = vpop.eup %3581 }
 0x144   :  { %v82_v46 = vmul.f32 %v3582_v45, %v63_v43 }
 0x146   :  { %v89_v48 = vadd.f32 %v88_v44, %v82_v46 }
 0x147   :  { %v3584_v49 = vpop.eup %3583 }
 0x148   :  { %v84_v50 = vmul.f32 %v3584_v49, %v64_v47  ;;  %3035 = vmatprep.mubr.msk.f32.mxu0 %vm37_vm0, %v89_v48 }
 0x14a   :  { %v90_v51 = vadd.f32 %v88_v44, %v84_v50 }
 0x14c   :  { %3036 = vmatmul.mubr.msk.f32.vlgmr.msra.gmra.mrb[0].mxu0 %vm37_vm0, %v90_v51 }
 0x21f   :  { %v3037_v54 = vpop.f32.mrb[0].mxu0 }
 0x220   :  { %v3803_v55 = vadd.f32 %v3037_v54, %v94_v53  ;;  %v167_v56 = vpop.f32.mrb[1].mxu0 }
 0x221   :  { %v3805_v57 = vadd.f32 %v167_v56, %v94_v53 }
 0x223   :  { %3042 = vmatprep.mubr.msk.f32.mxu1 %vm182_vm5, %v3805_v57  ;;  %v3811_v58 = vpack.i.bf16 %v3803_v55, %v3805_v57 }
 0x225   :  { %3443 = vrot.lane.b32.xlu1 %v3811_v58, %s3691_s6  ;;  %3438 = vrot.lane.b32.xlu0 %v3811_v58, %s3692_s7 }
 0x229   :  { %3448 = vrot.lane.b32.xlu0 %v3811_v58, %s3693_s8 }
 0x22d   :  { %370 = vrot.lane.b32.xlu0 %v3803_v55, %s3694_s9 }
 0x297   :  { %v3444_v59 = vpop.permute.xlu1 %3443  ;;  %v3439_v60 = vpop.permute.xlu0 %3438 }
 0x298   :  { %v3446_v61 = vunpack.i.h.bf16 %v3444_v59  ;;  %v3445_v62 = vunpack.i.l.bf16 %v3444_v59  ;;  %v3441_v63 = vunpack.i.h.bf16 %v3439_v60  ;;  %v3440_v2 = vunpack.i.l.bf16 %v3439_v60 }
 0x29a   :  { %v3262_v4 = vpack.c.bf16 %v3441_v63, %v3440_v2  ;;  %v3268_v5 = vpack.c.bf16 %v3446_v61, %v3445_v62 }
 0x29b   :  { %v3449_v6 = vpop.permute.xlu0 %3448 }
 0x29c   :  { %3264 = vmatprep.subr.msk.bf16.mxu1 %vm3823_vm6, %v3262_v4  ;;  %v3451_v7 = vunpack.i.h.bf16 %v3449_v6  ;;  %v3450_v8 = vunpack.i.l.bf16 %v3449_v6 }
 0x29d   :  { %3267 = vmatpush3.bf16.xpose.msk.msra.mxu1 %vm3823_vm6, %v3262_v4 }
 0x29e   :  { %3269 = vmatprep.subr.bf16.mxu1 %v3268_v5  ;;  %v3272_v9 = vpack.c.bf16 %v3451_v7, %v3450_v8 }
 0x29f   :  { %v371_v35 = vpop.permute.xlu0 %370 }
 0x2a4   :  { %3043 = vmatmul.mubr.msk.f32.vlgmr.msra.gmra.mrb[0].mxu1 %vm182_vm5, %v3803_v55 }
 0x2a5   :  { %3271 = vmatpush3.bf16.msra.mxu1 %v3268_v5 }
 0x2a6   :  { %3274 = vmatprep.subr.msk.bf16.mxu1 %vm3823_vm6, %v3272_v9 }
 0x377   :  { %v3044_v12 = vpop.f32.mrb[0].mxu1 }
 0x378   :  { %v263_v13 = vadd.f32 %v3044_v12, %v3838_v10  ;;  %v257_v18 = vpop.f32.mrb[1].mxu1 }
 0x379   :  { %v258_v20 = vadd.f32 %v257_v18, %v3843_v11 }
 0x37a   :  { %v268_v21 = vmul.f32 1.442695, %v263_v13 }
 0x37b   :  { %v266_v22 = vmul.f32 1.442695, %v258_v20 }
 0x37c   :  { %3585 = vpow2.f32 %v268_v21 }
 0x37d   :  { %3587 = vpow2.f32 %v266_v22 }
 0x386   :  { %v3586_v23 = vpop.eup %3585 }
 0x387   :  { %v274_v24 = vsel %vm270_vm7, %v3586_v23, 0.0  ;;  %v3588_v25 = vpop.eup %3587 }
 0x388   :  { %275 = vadd.xlane.f32.xlu1 %v274_v24  ;;  %v271_v26 = vsel %vm270_vm7, %v3588_v25, 0.0 }
 0x38c   :  { %272 = vadd.xlane.f32.xlu1 %v271_v26 }
 0x39d   :  { %368 = vrot.lane.b32.xlu1 %v3805_v57, %s3694_s9 }
 0x3a1   :  { %3458 = vrot.lane.b32.xlu1 %v3811_v58, %s3695_s14 }
 0x415   :  { %v276_v27 = vpop.xlane.xlu1 %275 }
 0x416   :  { %3589 = vrcp.f32 %v276_v27 }
 0x419   :  { %v273_v28 = vpop.xlane.xlu1 %272 }
 0x41a   :  { %3591 = vrcp.f32 %v273_v28 }
 0x41d   :  { %v369_v34 = vpop.permute.xlu1 %368 }
 0x420   :  { %v3590_v29 = vpop.eup %3589 }
 0x421   :  { %v280_v33 = vmul.f32 %v3590_v29, %v3586_v23  ;;  %v3459_v51 = vpop.permute.xlu1 %3458 }
 0x422   :  { %v3461_v59 = vunpack.i.h.bf16 %v3459_v51  ;;  %v3460_v60 = vunpack.i.l.bf16 %v3459_v51 }
 0x424   :  { %v3592_v30 = vpop.eup %3591  ;;  %v3282_v2 = vpack.c.bf16 %v3461_v59, %v3460_v60 }
 0x425   :  { %v279_v32 = vmul.f32 %v3592_v30, %v3588_v25 }
 0x427   :  { %3049 = vmatprep.mubr.msk.f32.mxu1 %vm270_vm7, %v279_v32 }
 0x428   :  { %3050 = vmatmul.mubr.msk.f32.vlgmr.msra.gmra.mrb[2].mxu1 %vm270_vm7, %v280_v33 }
 0x429   :  { %3277 = vmatpush3.bf16.xpose.msk.msra.mxu1 %vm3823_vm6, %v3272_v9  ;;  %3056 = vmatprep.mubr.msk.f32.mxu1 %vm182_vm5, %v369_v34 }
 0x430   :  { %3057 = vmatmul.mubr.msk.f32.vlgmr.msra.gmra.mrb[4].mxu1 %vm182_vm5, %v371_v35 }
 0x4fb   :  { %v3859_v36 = vpop.f32.mrb[2].mxu1 }
 0x4fc   :  { %v3861_v38 = vpop.f32.mrb[3].mxu1 }
 0x503   :  { %v3058_v40 = vpop.f32.mrb[4].mxu1 }
 0x504   :  { %v456_v41 = vadd.f32 %v3058_v40, %v3838_v10  ;;  %v450_v43 = vpop.f32.mrb[5].mxu1 }
 0x505   :  { %v451_v44 = vadd.f32 %v450_v43, %v3843_v11 }
 0x506   :  { %v461_v45 = vmul.f32 1.442695, %v456_v41 }
 0x507   :  { %v459_v46 = vmul.f32 1.442695, %v451_v44 }
 0x508   :  { %3593 = vpow2.f32 %v461_v45 }
 0x509   :  { %3595 = vpow2.f32 %v459_v46 }
 0x512   :  { %v3594_v47 = vpop.eup %3593 }
 0x513   :  { %v3596_v48 = vpop.eup %3595  ;;  %v466_v49 = vsel %vm270_vm7, %v3594_v47, 0.0 }
 0x514   :  { %467 = vadd.xlane.f32.xlu0 %v466_v49  ;;  %v463_v50 = vsel %vm270_vm7, %v3596_v48, 0.0 }
 0x515   :  { %464 = vadd.xlane.f32.xlu1 %v463_v50 }
 0x526   :  { %560 = vrot.lane.b32.xlu1 %v3805_v57, %s3696_s15 }
 0x52a   :  { %3453 = vrot.lane.b32.xlu0 %v3811_v58, %s3697_s16  ;;  %3468 = vrot.lane.b32.xlu1 %v3811_v58, %s3698_s17 }
 0x52e   :  { %562 = vrot.lane.b32.xlu0 %v3803_v55, %s3696_s15 }
 0x5a1   :  { %v468_v53 = vpop.xlane.xlu0 %467 }
 0x5a2   :  { %3597 = vrcp.f32 %v468_v53  ;;  %v465_v54 = vpop.xlane.xlu1 %464 }
 0x5a3   :  { %3599 = vrcp.f32 %v465_v54 }
 0x5a5   :  { %v3454_v56 = vpop.permute.xlu0 %3453 }
 0x5a6   :  { %v3456_v61 = vunpack.i.h.bf16 %v3454_v56  ;;  %v3455_v62 = vunpack.i.l.bf16 %v3454_v56  ;;  %v561_v8 = vpop.permute.xlu1 %560 }
 0x5a8   :  { %v3278_v63 = vpack.c.bf16 %v3456_v61, %v3455_v62 }
 0x5a9   :  { %v563_v9 = vpop.permute.xlu0 %562 }
 0x5aa   :  { %3279 = vmatprep.subr.bf16.mxu0 %v3278_v63  ;;  %v3469_v29 = vpop.permute.xlu1 %3468 }
 0x5ab   :  { %3281 = vmatpush3.bf16.msra.mxu0 %v3278_v63  ;;  %v3471_v34 = vunpack.i.h.bf16 %v3469_v29  ;;  %v3470_v35 = vunpack.i.l.bf16 %v3469_v29 }
 0x5ac   :  { %v3598_v4 = vpop.eup %3597  ;;  %3284 = vmatprep.subr.msk.bf16.mxu0 %vm3823_vm6, %v3282_v2 }
 0x5ad   :  { %v3600_v5 = vpop.eup %3599  ;;  %v472_v7 = vmul.f32 %v3598_v4, %v3594_v47  ;;  %v3292_v44 = vpack.c.bf16 %v3471_v34, %v3470_v35  ;;  %v3482_v4 = vpack.i.bf16 %v3776_v19, %v3767_v16 }
 0x5ae   :  { %v471_v6 = vmul.f32 %v3600_v5, %v3596_v48 }
 0x5b0   :  { %3063 = vmatprep.mubr.msk.f32.mxu0 %vm270_vm7, %v471_v6 }
 0x5b1   :  { %3064 = vmatmul.mubr.msk.f32.vlgmr.msra.gmra.mrb[2].mxu0 %vm270_vm7, %v472_v7 }
 0x5b2   :  { %3070 = vmatprep.mubr.msk.f32.mxu0 %vm182_vm5, %v561_v8 }
 0x5b4   :  { %3287 = vmatpush3.bf16.xpose.msk.msra.mxu0 %vm3823_vm6, %v3282_v2 }
 0x5bb   :  { %3071 = vmatmul.mubr.msk.f32.vlgmr.msra.gmra.mrb[4].mxu0 %vm182_vm5, %v563_v9 }
 0x684   :  { %v3883_v12 = vpop.f32.mrb[2].mxu0 }
 0x685   :  { %v3885_v13 = vpop.f32.mrb[3].mxu0 }
 0x68e   :  { %v3072_v18 = vpop.f32.mrb[4].mxu0 }
 0x68f   :  { %v648_v20 = vadd.f32 %v3072_v18, %v3838_v10  ;;  %v642_v21 = vpop.f32.mrb[5].mxu0 }
 0x690   :  { %v643_v22 = vadd.f32 %v642_v21, %v3843_v11 }
 0x691   :  { %v653_v23 = vmul.f32 1.442695, %v648_v20 }
 0x692   :  { %v651_v24 = vmul.f32 1.442695, %v643_v22 }
 0x693   :  { %3601 = vpow2.f32 %v653_v23 }
 0x694   :  { %3603 = vpow2.f32 %v651_v24 }
 0x69d   :  { %v3602_v25 = vpop.eup %3601 }
 0x69e   :  { %v3604_v26 = vpop.eup %3603  ;;  %v658_v27 = vsel %vm270_vm7, %v3602_v25, 0.0 }
 0x69f   :  { %659 = vadd.xlane.f32.xlu0 %v658_v27  ;;  %v655_v28 = vsel %vm270_vm7, %v3604_v26, 0.0 }
 0x6a0   :  { %656 = vadd.xlane.f32.xlu1 %v655_v28 }
 0x6b1   :  { %752 = vrot.lane.b32.xlu1 %v3805_v57, %s3699_s18 }
 0x6b5   :  { %3463 = vrot.lane.b32.xlu0 %v3811_v58, %s3700_s19 }
 0x6b9   :  { %754 = vrot.lane.b32.xlu0 %v3803_v55, %s3699_s18 }
 0x72c   :  { %v660_v30 = vpop.xlane.xlu0 %659 }
 0x72d   :  { %3605 = vrcp.f32 %v660_v30  ;;  %v657_v32 = vpop.xlane.xlu1 %656 }
 0x72e   :  { %3607 = vrcp.f32 %v657_v32 }
 0x730   :  { %v3464_v33 = vpop.permute.xlu0 %3463 }
 0x731   :  { %v3466_v40 = vunpack.i.h.bf16 %v3464_v33  ;;  %v3465_v41 = vunpack.i.l.bf16 %v3464_v33  ;;  %v753_v47 = vpop.permute.xlu1 %752 }
 0x733   :  { %v3288_v43 = vpack.c.bf16 %v3466_v40, %v3465_v41 }
 0x734   :  { %v755_v48 = vpop.permute.xlu0 %754 }
 0x735   :  { %3289 = vmatprep.subr.bf16.mxu1 %v3288_v43 }
 0x736   :  { %3291 = vmatpush3.bf16.msra.mxu1 %v3288_v43 }
 0x737   :  { %v3606_v57 = vpop.eup %3605  ;;  %3294 = vmatprep.subr.msk.bf16.mxu1 %vm3823_vm6, %v3292_v44 }
 0x738   :  { %v3608_v45 = vpop.eup %3607  ;;  %v664_v46 = vmul.f32 %v3606_v57, %v3602_v25 }
 0x739   :  { %v663_v55 = vmul.f32 %v3608_v45, %v3604_v26 }
 0x73b   :  { %3077 = vmatprep.mubr.msk.f32.mxu1 %vm270_vm7, %v663_v55 }
 0x73c   :  { %3078 = vmatmul.mubr.msk.f32.vlgmr.msra.gmra.mrb[6].mxu1 %vm270_vm7, %v664_v46 }
 0x73d   :  { %3084 = vmatprep.mubr.msk.f32.mxu1 %vm182_vm5, %v753_v47 }
 0x73f   :  { %3297 = vmatpush3.bf16.xpose.msk.msra.mxu1 %vm3823_vm6, %v3292_v44  ;;  %v3939_v44 = vsub.s32 1, %v3780_v31 }
 0x746   :  { %3085 = vmatmul.mubr.msk.f32.vlgmr.msra.gmra.mrb[8].mxu1 %vm182_vm5, %v755_v48 }
 0x80f   :  { %v3079_v49 = vpop.f32.mrb[6].mxu1 }
 0x810   :  { %v743_v50 = vpop.f32.mrb[7].mxu1 }
 0x819   :  { %v3086_v51 = vpop.f32.mrb[8].mxu1 }
 0x81a   :  { %v840_v53 = vadd.f32 %v3086_v51, %v3838_v10  ;;  %v834_v54 = vpop.f32.mrb[9].mxu1 }
 0x81b   :  { %v835_v56 = vadd.f32 %v834_v54, %v3843_v11 }
 0x81c   :  { %v845_v59 = vmul.f32 1.442695, %v840_v53 }
 0x81d   :  { %v843_v60 = vmul.f32 1.442695, %v835_v56 }
 0x81e   :  { %3609 = vpow2.f32 %v845_v59 }
 0x81f   :  { %3611 = vpow2.f32 %v843_v60 }
 0x828   :  { %v3610_v61 = vpop.eup %3609 }
 0x829   :  { %v3612_v62 = vpop.eup %3611  ;;  %v850_v63 = vsel %vm270_vm7, %v3610_v61, 0.0 }
 0x82a   :  { %851 = vadd.xlane.f32.xlu0 %v850_v63  ;;  %v847_v2 = vsel %vm270_vm7, %v3612_v62, 0.0  ;;  %v27_v63 = vld [vmem:[%s4280_s2 + $0x18] sm:$0xff] }
 0x82b   :  { %848 = vadd.xlane.f32.xlu1 %v847_v2  ;;  %v29_v2 = vld [vmem:[%s4280_s2 + $0x28] sm:$0xff] }
 0x83c   :  { %3478 = vrot.lane.b32.xlu1 %v3477_v17, %s3701_s20 }
 0x840   :  { %3473 = vrot.lane.b32.xlu0 %v3811_v58, %s3702_s21  ;;  %3483 = vrot.lane.b32.xlu1 %v3482_v4, %s3701_s20 }
 0x844   :  { %946 = vrot.lane.b32.xlu0 %v3885_v13, %s3703_s0  ;;  %948 = vrot.lane.b32.xlu1 %v3883_v12, %s3703_s0 }
 0x848   :  { %954 = vrot.lane.b32.xlu0 %v743_v50, %s3704_s22  ;;  %956 = vrot.lane.b32.xlu1 %v3079_v49, %s3704_s22 }
 0x8b7   :  { %v852_v14 = vpop.xlane.xlu0 %851 }
 0x8b8   :  { %3613 = vrcp.f32 %v852_v14  ;;  %v849_v15 = vpop.xlane.xlu1 %848  ;;  %v31_v14 = vld [vmem:[%s4280_s2 + $0x38] sm:$0xff] }
 0x8b9   :  { %3615 = vrcp.f32 %v849_v15  ;;  %v3314_v15 = vpack.c.bf16 %v31_v14, %v29_v2 }
 0x8bb   :  { %v3474_v16 = vpop.permute.xlu0 %3473 }
 0x8bc   :  { %v3476_v17 = vunpack.i.h.bf16 %v3474_v16  ;;  %v3475_v19 = vunpack.i.l.bf16 %v3474_v16  ;;  %v3479_v58 = vpop.permute.xlu1 %3478 }
 0x8bd   :  { %v3481_v5 = vunpack.i.h.bf16 %v3479_v58  ;;  %v3480_v6 = vunpack.i.l.bf16 %v3479_v58  ;;  %v33_v58 = vld [vmem:[%s4280_s2 + $0x58] sm:$0xff] }
 0x8be   :  { %v3298_v7 = vpack.c.bf16 %v3476_v17, %v3475_v19  ;;  %v3492_v17 = vpack.i.bf16 %v31_v14, %v29_v2  ;;  %v32_v19 = vld [vmem:[%s4280_s2 + $0x48] sm:$0xff] }
 0x8bf   :  { %v3302_v8 = vpack.c.bf16 %v3481_v5, %v3480_v6  ;;  %v947_v27 = vpop.permute.xlu0 %946  ;;  %v3497_v5 = vpack.i.bf16 %v33_v58, %v32_v19  ;;  %v34_v6 = vld [vmem:[%s4280_s2 + $0x68] sm:$0xff] }
 0x8c0   :  { %3299 = vmatprep.subr.bf16.mxu0 %v3298_v7  ;;  %v3484_v9 = vpop.permute.xlu1 %3483  ;;  %v968_v30 = vsel %vm182_vm5, %v3861_v38, %v947_v27  ;;  %v1077_v38 = vrot.slane %v3788_v39, %v3939_v44 }
 0x8c1   :  { %v3486_v12 = vunpack.i.h.bf16 %v3484_v9  ;;  %v3485_v13 = vunpack.i.l.bf16 %v3484_v9  ;;  %3301 = vmatpush3.bf16.msra.mxu0 %v3298_v7  ;;  %v35_v7 = vld [vmem:[%s4280_s2 + $0x78] sm:$0xff] }
 0x8c2   :  { %v3614_v18 = vpop.eup %3613  ;;  %3303 = vmatprep.subr.bf16.mxu0 %v3302_v8 }
 0x8c3   :  { %v3616_v20 = vpop.eup %3615  ;;  %v856_v22 = vmul.f32 %v3614_v18, %v3610_v61  ;;  %v3306_v23 = vpack.c.bf16 %v3486_v12, %v3485_v13  ;;  %v955_v29 = vpop.permute.xlu0 %954 }
 0x8c4   :  { %v855_v21 = vmul.f32 %v3616_v20, %v3612_v62  ;;  %v949_v26 = vpop.permute.xlu1 %948  ;;  %v970_v33 = vsel %vm270_vm7, %v968_v30, %v955_v29  ;;  %v25_v62 = vld [vmem:[%s4280_s2 + $0x8] sm:$0xff]  ;;  %v1102_v30 = vsub.s32 6, %v3780_v31 }
 0x8c5   :  { %v969_v34 = vsel %vm182_vm5, %v3859_v36, %v949_v26  ;;  %v3310_v4 = vpack.c.bf16 %v27_v63, %v25_v62  ;;  %v3487_v16 = vpack.i.bf16 %v27_v63, %v25_v62 }
 0x8c6   :  { %3091 = vmatprep.mubr.msk.f32.mxu0 %vm270_vm7, %v855_v21 }
 0x8c7   :  { %3092 = vmatmul.mubr.msk.f32.vlgmr.msra.gmra.mrb[6].mxu0 %vm270_vm7, %v856_v22  ;;  %3311 = vmatprep.subr.bf16.mxu1 %v3310_v4 }
 0x8c8   :  { %3305 = vmatpush3.bf16.msra.mxu0 %v3302_v8  ;;  %v957_v28 = vpop.permute.xlu1 %956  ;;  %3313 = vmatpush3.bf16.msra.mxu1 %v3310_v4  ;;  %v3502_v8 = vpack.i.bf16 %v35_v7, %v34_v6 }
 0x8c9   :  { %3307 = vmatprep.subr.bf16.mxu0 %v3306_v23  ;;  %v971_v40 = vsel %vm270_vm7, %v969_v34, %v957_v28  ;;  %3315 = vmatprep.subr.bf16.mxu1 %v3314_v15  ;;  %v1103_v34 = vrot.slane %v3788_v39, %v1102_v30 }
 0x8cc   :  { %3309 = vmatpush3.bf16.msra.mxu0 %v3306_v23  ;;  %3317 = vmatpush3.bf16.msra.mxu1 %v3314_v15 }
 0x99a   :  { %v3093_v24 = vpop.f32.mrb[6].mxu0 }
 0x99b   :  { %964 = vrot.lane.b32.xlu1 %v3093_v24, %s3705_s23  ;;  %v935_v25 = vpop.f32.mrb[7].mxu0 }
 0x99c   :  { %962 = vrot.lane.b32.xlu0 %v935_v25, %s3705_s23 }
 0xa0d   :  { %v965_v32 = vpop.permute.xlu1 %964 }
 0xa0e   :  { %v963_v35 = vpop.permute.xlu0 %962  ;;  %v974_v43 = vsel %vm972_vm8, %v971_v40, %v965_v32 }
 0xa0f   :  { %v973_v41 = vsel %vm972_vm8, %v970_v33, %v963_v35  ;;  %v1128_v35 = vsub.s32 7, %v3780_v31 }
 0xa10   :  { %3102 = vmatprep.mubr.msk.f32.mxu0 %vm37_vm0, %v973_v41 }
 0xa11   :  { %3103 = vmatmul.mubr.msk.f32.vlgmr.msra.gmra.mrb[8].mxu0 %vm37_vm0, %v974_v43 }
 0xae4   :  { %v3104_v57 = vpop.f32.mrb[8].mxu0 }
 0xae5   :  { %v1073_v36 = vadd.f32 %v3104_v57, %v3744_v1  ;;  %v1063_v45 = vpop.f32.mrb[9].mxu0 }
 0xae6   :  { %v1072_v55 = vadd.f32 %v1063_v45, %v3739_v0 }
 0xae7   :  { %v3945_v46 = vadd.f32 %v1077_v38, %v1073_v36 }
 0xae8   :  { %v3947_v47 = vadd.f32 %v1077_v38, %v1072_v55  ;;  %v1129_v55 = vrot.slane %v3788_v39, %v1128_v35 }
 0xae9   :  { %v1083_v48 = vsel %vm37_vm0, %v3945_v46, 0.0 }
 0xaea   :  { %1084 = vadd.xlane.f32.xlu1 %v1083_v48  ;;  %v1080_v49 = vsel %vm37_vm0, %v3947_v47, 0.0 }
 0xaeb   :  { %1081 = vadd.xlane.f32.xlu0 %v1080_v49 }
 0xafb   :  { %3493 = vrot.lane.b32.xlu1 %v3492_v17, %s3691_s6 }
 0xaff   :  { %3498 = vrot.lane.b32.xlu1 %v3497_v5, %s3691_s6 }
 0xb03   :  { %3503 = vrot.lane.b32.xlu1 %v3502_v8, %s3691_s6  ;;  %v1337_v8 = vsub.s32 5, %v3780_v31 }
 0xb77   :  { %v1085_v50 = vpop.xlane.xlu1 %1084 }
 0xb78   :  { %v1087_v51 = vmul.f32 0.03125, %v1085_v50  ;;  %v1082_v53 = vpop.xlane.xlu0 %1081 }
 0xb79   :  { %v1086_v54 = vmul.f32 0.03125, %v1082_v53 }
 0xb7a   :  { %v3954_v1 = vsub.f32 %v3945_v46, %v1087_v51 }
 0xb7b   :  { %v1088_v0 = vsub.f32 %v3947_v47, %v1086_v54  ;;  %v3494_v41 = vpop.permute.xlu1 %3493 }
 0xb7c   :  { %v1091_v60 = vmul.f32 %v3954_v1, %v3954_v1  ;;  %v3496_v57 = vunpack.i.h.bf16 %v3494_v41  ;;  %v3495_v36 = vunpack.i.l.bf16 %v3494_v41  ;;  %v4037_v41 = vld [vmem:[%s4280_s2 + $0xa0] sm:$0xff] }
 0xb7d   :  { %v1090_v56 = vmul.f32 %v1088_v0, %v1088_v0  ;;  %v1104_v45 = vmul.f32 %v1103_v34, %v1088_v0 }
 0xb7e   :  { %v1095_v61 = vsel %vm37_vm0, %v1091_v60, 0.0  ;;  %v3322_v50 = vpack.c.bf16 %v3496_v57, %v3495_v36 }
 0xb7f   :  { %v1092_v59 = vsel %vm37_vm0, %v1090_v56, 0.0  ;;  %v3499_v53 = vpop.permute.xlu1 %3498 }
 0xb80   :  { %1093 = vadd.xlane.f32.xlu0 %v1092_v59  ;;  %v3501_v54 = vunpack.i.h.bf16 %v3499_v53  ;;  %v3500_v56 = vunpack.i.l.bf16 %v3499_v53  ;;  %v1105_v59 = vmul.f32 %v1103_v34, %v3954_v1  ;;  %v1134_v1 = vsub.s32 4, %v3780_v31  ;;  %v4027_v34 = vld [vmem:[%s4280_s2 + $0x80] sm:$0xff] }
 0xb82   :  { %v3326_v62 = vpack.c.bf16 %v3501_v54, %v3500_v56 }
 0xb83   :  { %v3504_v63 = vpop.permute.xlu1 %3503 }
 0xb84   :  { %1096 = vadd.xlane.f32.xlu0 %v1095_v61  ;;  %v3506_v2 = vunpack.i.h.bf16 %v3504_v63  ;;  %v3505_v4 = vunpack.i.l.bf16 %v3504_v63  ;;  %v4051_v63 = vld [vmem:[%s4281_s3 + $0x8] sm:$0xff] }
 0xb86   :  { %v3330_v15 = vpack.c.bf16 %v3506_v2, %v3505_v4  ;;  %v1379_v4 = vrot.slane %v4051_v63, %v3783_v37 }
 0xb9a   :  { %3488 = vrot.lane.b32.xlu0 %v3487_v16, %s3691_s6  ;;  %v1135_v16 = vrot.slane %v3788_v39, %v1134_v1 }
 0xc0d   :  { %v1094_v9 = vpop.xlane.xlu0 %1093 }
 0xc0e   :  { %v1098_v12 = vmul.f32 0.032258064, %v1094_v9  ;;  %v1338_v9 = vrot.slane %v3788_v39, %v1337_v8 }
 0xc10   :  { %3617 = vrsqrt.f32 %v1098_v12  ;;  %vm1108_vm9 = vcmp.eq.f32.partialorder %v1098_v12, inf  ;;  %v1111_v22 = vand.u32 2147483648, %v1098_v12  ;;  %vm1110_vm10 = vcmp.eq.f32.partialorder %v1098_v12, 0.0 }
 0xc11   :  { %v1097_v13 = vpop.xlane.xlu0 %1096 }
 0xc12   :  { %v1099_v18 = vmul.f32 0.032258064, %v1097_v13 }
 0xc14   :  { %3619 = vrsqrt.f32 %v1099_v18  ;;  %vm1115_vm11 = vcmp.eq.f32.partialorder %v1099_v18, inf  ;;  %v1118_v28 = vand.u32 2147483648, %v1099_v18  ;;  %vm1117_vm12 = vcmp.eq.f32.partialorder %v1099_v18, 0.0 }
 0xc15   :  { %v3489_v40 = vpop.permute.xlu0 %3488 }
 0xc16   :  { %v3491_v43 = vunpack.i.h.bf16 %v3489_v40  ;;  %v3490_v38 = vunpack.i.l.bf16 %v3489_v40  ;;  %v4032_v40 = vld [vmem:[%s4280_s2 + $0x90] sm:$0xff] }
 0xc18   :  { %v3318_v49 = vpack.c.bf16 %v3491_v43, %v3490_v38  ;;  %v3334_v43 = vpack.c.bf16 %v4032_v40, %v4027_v34  ;;  %v4044_v38 = vld [vmem:[%s4280_s2 + $0xb0] sm:$0xff] }
 0xc19   :  { %v3338_v57 = vpack.c.bf16 %v4044_v38, %v4037_v41 }
 0xc1a   :  { %v3618_v20 = vpop.eup %3617  ;;  %3319 = vmatprep.subr.bf16.mxu0 %v3318_v49  ;;  %3335 = vmatprep.subr.bf16.mxu1 %v3334_v43 }
 0xc1b   :  { %v1107_v21 = vmul.f32 %v3618_v20, %v1098_v12  ;;  %3321 = vmatpush3.bf16.msra.mxu0 %v3318_v49 }
 0xc1c   :  { %3323 = vmatprep.subr.bf16.mxu0 %v3322_v50 }
 0xc1d   :  { %v1109_v23 = vsel %vm1108_vm9, %v1098_v12, %v1107_v21 }
 0xc1e   :  { %v3620_v24 = vpop.eup %3619  ;;  %v1112_v25 = vsel %vm1110_vm10, %v1111_v22, %v1109_v23 }
 0xc1f   :  { %v1114_v26 = vmul.f32 %v3620_v24, %v1099_v18  ;;  %v1120_v27 = vadd.f32 1e-06, %v1112_v25  ;;  %3325 = vmatpush3.bf16.msra.mxu0 %v3322_v50 }
 0xc20   :  { %3327 = vmatprep.subr.bf16.mxu0 %v3326_v62 }
 0xc21   :  { %v1116_v29 = vsel %vm1115_vm11, %v1099_v18, %v1114_v26  ;;  %3621 = vrcp.f32 %v1120_v27 }
 0xc22   :  { %v1119_v32 = vsel %vm1117_vm12, %v1118_v28, %v1116_v29 }
 0xc23   :  { %v1121_v33 = vadd.f32 1e-06, %v1119_v32  ;;  %3329 = vmatpush3.bf16.msra.mxu0 %v3326_v62 }
 0xc24   :  { %3331 = vmatprep.subr.bf16.mxu0 %v3330_v15 }
 0xc25   :  { %3623 = vrcp.f32 %v1121_v33 }
 0xc27   :  { %3333 = vmatpush3.bf16.msra.mxu0 %v3330_v15 }
 0xc2b   :  { %v3622_v48 = vpop.eup %3621 }
 0xc2c   :  { %v1123_v51 = vmul.f32 %v3622_v48, %v1104_v45 }
 0xc2e   :  { %v1130_v60 = vadd.f32 %v1129_v55, %v1123_v51 }
 0xc2f   :  { %v3624_v61 = vpop.eup %3623 }
 0xc30   :  { %v1125_v0 = vmul.f32 %v3624_v61, %v1105_v59  ;;  %3113 = vmatprep.mubr.msk.f32.mxu1 %vm37_vm0, %v1130_v60 }
 0xc32   :  { %v1131_v14 = vadd.f32 %v1129_v55, %v1125_v0 }
 0xc34   :  { %3114 = vmatmul.mubr.msk.f32.vlgmr.msra.gmra.mrb[10].mxu1 %vm37_vm0, %v1131_v14  ;;  %v1405_v14 = vrot.slane %v4051_v63, %v87_v42 }
 0xc35   :  { %3337 = vmatpush3.bf16.msra.mxu1 %v3334_v43 }
 0xc36   :  { %3339 = vmatprep.subr.bf16.mxu1 %v3338_v57 }
 0xc39   :  { %3341 = vmatpush3.bf16.msra.mxu1 %v3338_v57 }
 0xd07   :  { %v3115_v17 = vpop.f32.mrb[10].mxu1 }
 0xd08   :  { %v1214_v19 = vadd.f32 %v3115_v17, %v1135_v16  ;;  %v1208_v58 = vpop.f32.mrb[11].mxu1 }
 0xd09   :  { %v1209_v5 = vadd.f32 %v1208_v58, %v1135_v16 }
 0xd0a   :  { %v1218_v7 = vmax.f32 %v1214_v19, 0.0 }
 0xd0b   :  { %v1217_v6 = vmax.f32 %v1209_v5, 0.0 }
 0xd0d   :  { %3132 = vmatprep.mubr.msk.f32.mxu0 %vm1251_vm13, %v1217_v6 }
 0xd0e   :  { %3133 = vmatmul.mubr.msk.f32.vlgmr.msra.gmra.mrb[10].mxu0 %vm1251_vm13, %v1218_v7 }
 0xde1   :  { %v3134_v12 = vpop.f32.mrb[10].mxu0 }
 0xde2   :  { %v1334_v13 = vadd.f32 %v3134_v12, %v3945_v46  ;;  %v1324_v18 = vpop.f32.mrb[11].mxu0 }
 0xde3   :  { %v1333_v20 = vadd.f32 %v1324_v18, %v3947_v47 }
 0xde4   :  { %v4012_v21 = vadd.f32 %v1338_v9, %v1334_v13 }
 0xde5   :  { %v4014_v22 = vadd.f32 %v1338_v9, %v1333_v20  ;;  %v1411_v9 = vrot.slane %v4051_v63, %v3799_v52 }
 0xde6   :  { %v1359_v23 = vsel %vm37_vm0, %v4012_v21, 0.0 }
 0xde7   :  { %1360 = vadd.xlane.f32.xlu1 %v1359_v23  ;;  %v1356_v24 = vsel %vm37_vm0, %v4014_v22, 0.0 }
 0xde8   :  { %1357 = vadd.xlane.f32.xlu0 %v1356_v24 }
 0xe74   :  { %v1361_v25 = vpop.xlane.xlu1 %1360 }
 0xe75   :  { %v1363_v39 = vmul.f32 0.03125, %v1361_v25  ;;  %v1358_v26 = vpop.xlane.xlu0 %1357 }
 0xe76   :  { %v1362_v27 = vmul.f32 0.03125, %v1358_v26 }
 0xe77   :  { %v1365_v46 = vsub.f32 %v4012_v21, %v1363_v39 }
 0xe78   :  { %v1364_v47 = vsub.f32 %v4014_v22, %v1362_v27 }
 0xe79   :  { %v1367_v32 = vmul.f32 %v1365_v46, %v1365_v46  ;;  %v1381_v19 = vmul.f32 %v1379_v4, %v1365_v46 }
 0xe7a   :  { %v1366_v28 = vmul.f32 %v1364_v47, %v1364_v47  ;;  %v1380_v15 = vmul.f32 %v1379_v4, %v1364_v47 }
 0xe7b   :  { %v1371_v33 = vsel %vm37_vm0, %v1367_v32, 0.0 }
 0xe7c   :  { %v1368_v29 = vsel %vm37_vm0, %v1366_v28, 0.0 }
 0xe7d   :  { %1369 = vadd.xlane.f32.xlu0 %v1368_v29 }
 0xe81   :  { %1372 = vadd.xlane.f32.xlu0 %v1371_v33 }
 0xf0a   :  { %v1370_v36 = vpop.xlane.xlu0 %1369 }
 0xf0b   :  { %v1374_v45 = vmul.f32 0.032258064, %v1370_v36 }
 0xf0d   :  { %3625 = vrsqrt.f32 %v1374_v45  ;;  %vm1384_vm14 = vcmp.eq.f32.partialorder %v1374_v45, inf  ;;  %v1387_v51 = vand.u32 2147483648, %v1374_v45  ;;  %vm1386_vm15 = vcmp.eq.f32.partialorder %v1374_v45, 0.0 }
 0xf0e   :  { %v1373_v55 = vpop.xlane.xlu0 %1372 }
 0xf0f   :  { %v1375_v48 = vmul.f32 0.032258064, %v1373_v55 }
 0xf11   :  { %3627 = vrsqrt.f32 %v1375_v48  ;;  %vm1391_vm1 = vcmp.eq.f32.partialorder %v1375_v48, inf  ;;  %v1394_v61 = vand.u32 2147483648, %v1375_v48  ;;  %vm1393_vm2 = vcmp.eq.f32.partialorder %v1375_v48, 0.0 }
 0xf17   :  { %v3626_v49 = vpop.eup %3625 }
 0xf18   :  { %v1383_v50 = vmul.f32 %v3626_v49, %v1374_v45 }
 0xf1a   :  { %v1385_v53 = vsel %vm1384_vm14, %v1374_v45, %v1383_v50 }
 0xf1b   :  { %v3628_v54 = vpop.eup %3627  ;;  %v1388_v56 = vsel %vm1386_vm15, %v1387_v51, %v1385_v53 }
 0xf1c   :  { %v1390_v59 = vmul.f32 %v3628_v54, %v1375_v48  ;;  %v1396_v60 = vadd.f32 1e-06, %v1388_v56 }
 0xf1e   :  { %v1392_v62 = vsel %vm1391_vm1, %v1375_v48, %v1390_v59  ;;  %3629 = vrcp.f32 %v1396_v60 }
 0xf1f   :  { %v1395_v0 = vsel %vm1393_vm2, %v1394_v61, %v1392_v62 }
 0xf20   :  { %v1397_v2 = vadd.f32 1e-06, %v1395_v0 }
 0xf22   :  { %3631 = vrcp.f32 %v1397_v2 }
 0xf28   :  { %v3630_v16 = vpop.eup %3629 }
 0xf29   :  { %v1399_v17 = vmul.f32 %v3630_v16, %v1380_v15 }
 0xf2b   :  { %v1406_v58 = vadd.f32 %v1405_v14, %v1399_v17 }
 0xf2c   :  { %v3632_v5 = vpop.eup %3631 }
 0xf2d   :  { %3143 = vmatprep.mubr.msk.f32.mxu1 %vm37_vm0, %v1406_v58  ;;  %v1401_v6 = vmul.f32 %v3632_v5, %v1381_v19 }
 0xf2f   :  { %v1407_v7 = vadd.f32 %v1405_v14, %v1401_v6 }
 0xf31   :  { %3144 = vmatmul.mubr.msk.f32.vlgmr.msra.gmra.mrb[12].mxu1 %vm37_vm0, %v1407_v7 }
0x1004   :  { %v3145_v12 = vpop.f32.mrb[12].mxu1 }
0x1005   :  { %v4062_v13 = vadd.f32 %v3145_v12, %v1411_v9  ;;  %v1484_v18 = vpop.f32.mrb[13].mxu1 }
0x1006   :  { %v4064_v42 = vadd.f32 %v1484_v18, %v1411_v9 }
0x1008   :  { %3150 = vmatprep.mubr.msk.f32.mxu1 %vm182_vm5, %v4064_v42  ;;  %v4070_v20 = vpack.i.bf16 %v4062_v13, %v4064_v42 }
0x100a   :  { %3513 = vrot.lane.b32.xlu1 %v4070_v20, %s3693_s8  ;;  %3508 = vrot.lane.b32.xlu0 %v4070_v20, %s3692_s7 }
0x100e   :  { %1683 = vrot.lane.b32.xlu1 %v4064_v42, %s3694_s9 }
0x1012   :  { %1685 = vrot.lane.b32.xlu1 %v4062_v13, %s3694_s9 }
0x107c   :  { %v3514_v23 = vpop.permute.xlu1 %3513  ;;  %v3509_v24 = vpop.permute.xlu0 %3508 }
0x107d   :  { %v3516_v25 = vunpack.i.h.bf16 %v3514_v23  ;;  %v3515_v39 = vunpack.i.l.bf16 %v3514_v23  ;;  %v3511_v26 = vunpack.i.h.bf16 %v3509_v24  ;;  %v3510_v27 = vunpack.i.l.bf16 %v3509_v24 }
0x107f   :  { %v3342_v46 = vpack.c.bf16 %v3511_v26, %v3510_v27  ;;  %v3352_v47 = vpack.c.bf16 %v3516_v25, %v3515_v39 }
0x1080   :  { %v1684_v28 = vpop.permute.xlu1 %1683 }
0x1081   :  { %3344 = vmatprep.subr.msk.bf16.mxu1 %vm3823_vm6, %v3342_v46 }
0x1082   :  { %3347 = vmatpush3.bf16.xpose.msk.msra.mxu1 %vm3823_vm6, %v3342_v46 }
0x1083   :  { %3354 = vmatprep.subr.msk.bf16.mxu1 %vm3823_vm6, %v3352_v47 }
0x1084   :  { %v1686_v29 = vpop.permute.xlu1 %1685 }
0x1089   :  { %3151 = vmatmul.mubr.msk.f32.vlgmr.msra.gmra.mrb[14].mxu1 %vm182_vm5, %v4062_v13 }
0x108a   :  { %3357 = vmatpush3.bf16.xpose.msk.msra.mxu1 %vm3823_vm6, %v3352_v47  ;;  %3164 = vmatprep.mubr.msk.f32.mxu1 %vm182_vm5, %v1684_v28 }
0x1091   :  { %3165 = vmatmul.mubr.msk.f32.vlgmr.msra.gmra.mrb[16].mxu1 %vm182_vm5, %v1686_v29 }
0x115c   :  { %v3152_v32 = vpop.f32.mrb[14].mxu1 }
0x115d   :  { %v1579_v33 = vadd.f32 %v3152_v32, %v3838_v10  ;;  %v1573_v43 = vpop.f32.mrb[15].mxu1 }
0x115e   :  { %v1574_v57 = vadd.f32 %v1573_v43, %v3843_v11 }
0x115f   :  { %v1584_v36 = vmul.f32 1.442695, %v1579_v33 }
0x1160   :  { %v1582_v45 = vmul.f32 1.442695, %v1574_v57 }
0x1161   :  { %3633 = vpow2.f32 %v1584_v36 }
0x1162   :  { %3635 = vpow2.f32 %v1582_v45 }
0x1164   :  { %v3166_v55 = vpop.f32.mrb[16].mxu1 }
0x1165   :  { %v1771_v48 = vadd.f32 %v3166_v55, %v3838_v10  ;;  %v1765_v49 = vpop.f32.mrb[17].mxu1  ;;  %v3689_v55 = vld [vmem:[%s4282_s1 + $0x8] sm:$0xff] }
0x1166   :  { %v1766_v50 = vadd.f32 %v1765_v49, %v3843_v11 }
0x1167   :  { %v1776_v51 = vmul.f32 1.442695, %v1771_v48 }
0x1168   :  { %v1774_v53 = vmul.f32 1.442695, %v1766_v50  ;;  %v3690_v50 = vld [vmem:[%s4282_s1] sm:$0xff] }
0x1169   :  { %3637 = vpow2.f32 %v1776_v51 }
0x116a   :  { %3639 = vpow2.f32 %v1774_v53 }
0x116b   :  { %v3634_v54 = vpop.eup %3633 }
0x116c   :  { %v3636_v56 = vpop.eup %3635  ;;  %v1589_v59 = vsel %vm270_vm7, %v3634_v54, 0.0 }
0x116d   :  { %1590 = vadd.xlane.f32.xlu1 %v1589_v59  ;;  %v1586_v60 = vsel %vm270_vm7, %v3636_v56, 0.0 }
0x116e   :  { %1587 = vadd.xlane.f32.xlu0 %v1586_v60 }
0x1173   :  { %v3638_v61 = vpop.eup %3637 }
0x1174   :  { %v1781_v62 = vsel %vm270_vm7, %v3638_v61, 0.0  ;;  %v3640_v0 = vpop.eup %3639 }
0x1175   :  { %1782 = vadd.xlane.f32.xlu0 %v1781_v62  ;;  %v1778_v10 = vsel %vm270_vm7, %v3640_v0, 0.0 }
0x1179   :  { %1779 = vadd.xlane.f32.xlu0 %v1778_v10 }
0x117e   :  { %3523 = vrot.lane.b32.xlu1 %v4070_v20, %s3697_s16 }
0x1182   :  { %3528 = vrot.lane.b32.xlu1 %v4070_v20, %s3695_s14 }
0x1186   :  { %1875 = vrot.lane.b32.xlu1 %v4064_v42, %s3696_s15 }
0x118a   :  { %3538 = vrot.lane.b32.xlu1 %v4070_v20, %s3698_s17 }
0x118f   :  { %3518 = vrot.lane.b32.xlu0 %v4070_v20, %s3691_s6 }
0x1193   :  { %1877 = vrot.lane.b32.xlu0 %v4062_v13, %s3696_s15 }
0x11fa   :  { %v1591_v2 = vpop.xlane.xlu1 %1590 }
0x11fb   :  { %v1588_v11 = vpop.xlane.xlu0 %1587 }
0x11fc   :  { %3641 = vrcp.f32 %v1588_v11 }
0x11fd   :  { %3643 = vrcp.f32 %v1591_v2 }
0x11fe   :  { %v3524_v15 = vpop.permute.xlu1 %3523 }
0x11ff   :  { %v3526_v58 = vunpack.i.h.bf16 %v3524_v15  ;;  %v3525_v5 = vunpack.i.l.bf16 %v3524_v15 }
0x1201   :  { %v3358_v23 = vpack.c.bf16 %v3526_v58, %v3525_v5 }
0x1202   :  { %v1783_v4 = vpop.xlane.xlu0 %1782  ;;  %v3529_v9 = vpop.permute.xlu1 %3528 }
0x1203   :  { %v3531_v24 = vunpack.i.h.bf16 %v3529_v9  ;;  %v3530_v25 = vunpack.i.l.bf16 %v3529_v9 }
0x1205   :  { %v3362_v47 = vpack.c.bf16 %v3531_v24, %v3530_v25 }
0x1206   :  { %v3642_v14 = vpop.eup %3641  ;;  %v1780_v16 = vpop.xlane.xlu0 %1779 }
0x1207   :  { %3645 = vrcp.f32 %v1780_v16  ;;  %v1594_v17 = vmul.f32 %v3642_v14, %v3636_v56  ;;  %v3644_v18 = vpop.eup %3643  ;;  %v1876_v29 = vpop.permute.xlu1 %1875 }
0x1208   :  { %3647 = vrcp.f32 %v1783_v4  ;;  %v1595_v26 = vmul.f32 %v3644_v18, %v3634_v54 }
0x1209   :  { %3157 = vmatprep.mubr.msk.f32.mxu0 %vm270_vm7, %v1594_v17 }
0x120a   :  { %v3519_v19 = vpop.permute.xlu0 %3518 }
0x120b   :  { %v3521_v6 = vunpack.i.h.bf16 %v3519_v19  ;;  %v3520_v7 = vunpack.i.l.bf16 %v3519_v19  ;;  %v3539_v62 = vpop.permute.xlu1 %3538 }
0x120c   :  { %v3541_v2 = vunpack.i.h.bf16 %v3539_v62  ;;  %v3540_v4 = vunpack.i.l.bf16 %v3539_v62 }
0x120d   :  { %v3348_v12 = vpack.c.bf16 %v3521_v6, %v3520_v7 }
0x120e   :  { %v1878_v32 = vpop.permute.xlu0 %1877  ;;  %v3372_v17 = vpack.c.bf16 %v3541_v2, %v3540_v4 }
0x120f   :  { %3349 = vmatprep.subr.bf16.mxu0 %v3348_v12 }
0x1210   :  { %3351 = vmatpush3.bf16.msra.mxu0 %v3348_v12 }
0x1211   :  { %v3646_v39 = vpop.eup %3645  ;;  %3359 = vmatprep.subr.bf16.mxu0 %v3358_v23 }
0x1212   :  { %v3648_v27 = vpop.eup %3647  ;;  %v1786_v46 = vmul.f32 %v3646_v39, %v3640_v0 }
0x1213   :  { %3158 = vmatmul.mubr.msk.f32.vlgmr.msra.gmra.mrb[12].mxu0 %vm270_vm7, %v1595_v26  ;;  %v1787_v28 = vmul.f32 %v3648_v27, %v3638_v61 }
0x1214   :  { %3361 = vmatpush3.bf16.msra.mxu0 %v3358_v23  ;;  %3171 = vmatprep.mubr.msk.f32.mxu0 %vm270_vm7, %v1786_v46 }
0x1215   :  { %3364 = vmatprep.subr.msk.bf16.mxu0 %vm3823_vm6, %v3362_v47 }
0x1217   :  { %3172 = vmatmul.mubr.msk.f32.vlgmr.msra.gmra.mrb[14].mxu0 %vm270_vm7, %v1787_v28  ;;  %v3552_v28 = vpack.i.bf16 %v4044_v38, %v4037_v41 }
0x1218   :  { %3178 = vmatprep.mubr.msk.f32.mxu0 %vm182_vm5, %v1876_v29 }
0x121d   :  { %3367 = vmatpush3.bf16.xpose.msk.msra.mxu0 %vm3823_vm6, %v3362_v47  ;;  %v3547_v47 = vpack.i.bf16 %v4032_v40, %v4027_v34 }
0x1224   :  { %3179 = vmatmul.mubr.msk.f32.vlgmr.msra.gmra.mrb[16].mxu0 %vm182_vm5, %v1878_v32 }
0x12e6   :  { %v4122_v33 = vpop.f32.mrb[12].mxu0 }
0x12e7   :  { %v4124_v43 = vpop.f32.mrb[13].mxu0 }
0x12ea   :  { %v4126_v57 = vpop.f32.mrb[14].mxu0 }
0x12eb   :  { %v4128_v36 = vpop.f32.mrb[15].mxu0 }
0x12f7   :  { %v3180_v45 = vpop.f32.mrb[16].mxu0 }
0x12f8   :  { %v1963_v48 = vadd.f32 %v3689_v55, %v3180_v45  ;;  %v1957_v49 = vpop.f32.mrb[17].mxu0 }
0x12f9   :  { %v1958_v51 = vadd.f32 %v3690_v50, %v1957_v49 }
0x12fa   :  { %v1968_v53 = vmul.f32 1.442695, %v1963_v48 }
0x12fb   :  { %v1966_v54 = vmul.f32 1.442695, %v1958_v51 }
0x12fc   :  { %3649 = vpow2.f32 %v1968_v53 }
0x12fd   :  { %3651 = vpow2.f32 %v1966_v54 }
0x1306   :  { %v3650_v56 = vpop.eup %3649 }
0x1307   :  { %v3652_v59 = vpop.eup %3651  ;;  %v1973_v60 = vsel %vm270_vm7, %v3650_v56, 0.0 }
0x1308   :  { %1974 = vadd.xlane.f32.xlu0 %v1973_v60  ;;  %v1970_v61 = vsel %vm270_vm7, %v3652_v59, 0.0 }
0x1309   :  { %1971 = vadd.xlane.f32.xlu1 %v1970_v61 }
0x131a   :  { %2067 = vrot.lane.b32.xlu1 %v4064_v42, %s3699_s18 }
0x131e   :  { %3533 = vrot.lane.b32.xlu0 %v4070_v20, %s3700_s19 }
0x1322   :  { %2069 = vrot.lane.b32.xlu0 %v4062_v13, %s3699_s18 }
0x1395   :  { %v1975_v0 = vpop.xlane.xlu0 %1974 }
0x1396   :  { %3653 = vrcp.f32 %v1975_v0  ;;  %v1972_v10 = vpop.xlane.xlu1 %1971 }
0x1397   :  { %3655 = vrcp.f32 %v1972_v10 }
0x1399   :  { %v3534_v11 = vpop.permute.xlu0 %3533 }
0x139a   :  { %v3536_v14 = vunpack.i.h.bf16 %v3534_v11  ;;  %v3535_v15 = vunpack.i.l.bf16 %v3534_v11  ;;  %v2068_v5 = vpop.permute.xlu1 %2067 }
0x139c   :  { %v3368_v16 = vpack.c.bf16 %v3536_v14, %v3535_v15 }
0x139d   :  { %v2070_v6 = vpop.permute.xlu0 %2069 }
0x139e   :  { %3369 = vmatprep.subr.bf16.mxu1 %v3368_v16 }
0x139f   :  { %3371 = vmatpush3.bf16.msra.mxu1 %v3368_v16 }
0x13a0   :  { %v3654_v42 = vpop.eup %3653  ;;  %3374 = vmatprep.subr.msk.bf16.mxu1 %vm3823_vm6, %v3372_v17 }
0x13a1   :  { %v3656_v19 = vpop.eup %3655  ;;  %v1979_v58 = vmul.f32 %v3654_v42, %v3650_v56 }
0x13a2   :  { %v1978_v13 = vmul.f32 %v3656_v19, %v3652_v59 }
0x13a4   :  { %3185 = vmatprep.mubr.msk.f32.mxu1 %vm270_vm7, %v1978_v13 }
0x13a5   :  { %3186 = vmatmul.mubr.msk.f32.vlgmr.msra.gmra.mrb[18].mxu1 %vm270_vm7, %v1979_v58 }
0x13a6   :  { %3192 = vmatprep.mubr.msk.f32.mxu1 %vm182_vm5, %v2068_v5 }
0x13a8   :  { %3377 = vmatpush3.bf16.xpose.msk.msra.mxu1 %vm3823_vm6, %v3372_v17 }
0x13af   :  { %3193 = vmatmul.mubr.msk.f32.vlgmr.msra.gmra.mrb[20].mxu1 %vm182_vm5, %v2070_v6 }
0x1478   :  { %v3187_v7 = vpop.f32.mrb[18].mxu1 }
0x1479   :  { %v2058_v9 = vpop.f32.mrb[19].mxu1 }
0x1482   :  { %v3194_v12 = vpop.f32.mrb[20].mxu1 }
0x1483   :  { %v2155_v18 = vadd.f32 %v3689_v55, %v3194_v12  ;;  %v2149_v23 = vpop.f32.mrb[21].mxu1 }
0x1484   :  { %v2150_v24 = vadd.f32 %v3690_v50, %v2149_v23 }
0x1485   :  { %v2160_v25 = vmul.f32 1.442695, %v2155_v18 }
0x1486   :  { %v2158_v39 = vmul.f32 1.442695, %v2150_v24 }
0x1487   :  { %3657 = vpow2.f32 %v2160_v25 }
0x1488   :  { %3659 = vpow2.f32 %v2158_v39 }
0x1491   :  { %v3658_v26 = vpop.eup %3657 }
0x1492   :  { %v3660_v27 = vpop.eup %3659  ;;  %v2165_v46 = vsel %vm270_vm7, %v3658_v26, 0.0 }
0x1493   :  { %2166 = vadd.xlane.f32.xlu0 %v2165_v46  ;;  %v2162_v3 = vsel %vm270_vm7, %v3660_v27, 0.0  ;;  %v2855_v46 = vld [vmem:[%s4280_s2 + $0x88] sm:$0xff] }
0x1494   :  { %2163 = vadd.xlane.f32.xlu1 %v2162_v3  ;;  %v2857_v3 = vld [vmem:[%s4280_s2 + $0x98] sm:$0xff] }
0x14a5   :  { %3548 = vrot.lane.b32.xlu1 %v3547_v47, %s3701_s20  ;;  %v2859_v47 = vld [vmem:[%s4280_s2 + $0xa8] sm:$0xff] }
0x14a9   :  { %3543 = vrot.lane.b32.xlu0 %v4070_v20, %s3702_s21  ;;  %3553 = vrot.lane.b32.xlu1 %v3552_v28, %s3701_s20  ;;  %v3390_v28 = vpack.c.bf16 %v2857_v3, %v2855_v46 }
0x14ab   :  { %3391 = vmatprep.subr.bf16.mxu1 %v3390_v28 }
0x14ac   :  { %3393 = vmatpush3.bf16.msra.mxu1 %v3390_v28 }
0x14ad   :  { %2261 = vrot.lane.b32.xlu0 %v4128_v36, %s3703_s0  ;;  %2263 = vrot.lane.b32.xlu1 %v4126_v57, %s3703_s0 }
0x14b1   :  { %2269 = vrot.lane.b32.xlu0 %v2058_v9, %s3704_s22  ;;  %2271 = vrot.lane.b32.xlu1 %v3187_v7, %s3704_s22 }
0x1520   :  { %v2167_v34 = vpop.xlane.xlu0 %2166 }
0x1521   :  { %3661 = vrcp.f32 %v2167_v34  ;;  %v2164_v40 = vpop.xlane.xlu1 %2163  ;;  %v2861_v34 = vld [vmem:[%s4280_s2 + $0xb8] sm:$0xff] }
0x1522   :  { %3663 = vrcp.f32 %v2164_v40  ;;  %v3394_v40 = vpack.c.bf16 %v2861_v34, %v2859_v47 }
0x1524   :  { %v3544_v41 = vpop.permute.xlu0 %3543  ;;  %3395 = vmatprep.subr.bf16.mxu1 %v3394_v40 }
0x1525   :  { %v3546_v38 = vunpack.i.h.bf16 %v3544_v41  ;;  %v3545_v29 = vunpack.i.l.bf16 %v3544_v41  ;;  %v3549_v20 = vpop.permute.xlu1 %3548  ;;  %3397 = vmatpush3.bf16.msra.mxu1 %v3394_v40  ;;  %v3557_v41 = vpack.i.bf16 %v2857_v3, %v2855_v46 }
0x1526   :  { %v3551_v32 = vunpack.i.h.bf16 %v3549_v20  ;;  %v3550_v45 = vunpack.i.l.bf16 %v3549_v20  ;;  %v2863_v20 = vld [vmem:[%s4280_s2 + $0xd8] sm:$0xff] }
0x1527   :  { %v3378_v55 = vpack.c.bf16 %v3546_v38, %v3545_v29  ;;  %v3562_v38 = vpack.i.bf16 %v2861_v34, %v2859_v47  ;;  %v2862_v29 = vld [vmem:[%s4280_s2 + $0xc8] sm:$0xff] }
0x1528   :  { %v3382_v48 = vpack.c.bf16 %v3551_v32, %v3550_v45  ;;  %v2262_v62 = vpop.permute.xlu0 %2261  ;;  %v3567_v32 = vpack.i.bf16 %v2863_v20, %v2862_v29  ;;  %v2864_v45 = vld [vmem:[%s4280_s2 + $0xe8] sm:$0xff]  ;;  %v2651_v29 = vrot.slane %v4051_v63, %v1337_v8 }
0x1529   :  { %3379 = vmatprep.subr.bf16.mxu0 %v3378_v55  ;;  %v3554_v36 = vpop.permute.xlu1 %3553  ;;  %v2283_v11 = vsel %vm182_vm5, %v4124_v43, %v2262_v62  ;;  %v2391_v43 = vrot.slane %v4051_v63, %v3939_v44 }
0x152a   :  { %v3556_v49 = vunpack.i.h.bf16 %v3554_v36  ;;  %v3555_v57 = vunpack.i.l.bf16 %v3554_v36  ;;  %3381 = vmatpush3.bf16.msra.mxu0 %v3378_v55  ;;  %v2865_v55 = vld [vmem:[%s4280_s2 + $0xf8] sm:$0xff] }
0x152b   :  { %v3662_v50 = vpop.eup %3661  ;;  %3383 = vmatprep.subr.bf16.mxu0 %v3382_v48 }
0x152c   :  { %v3664_v51 = vpop.eup %3663  ;;  %v2171_v54 = vmul.f32 %v3662_v50, %v3658_v26  ;;  %v3386_v56 = vpack.c.bf16 %v3556_v49, %v3555_v57  ;;  %v2270_v10 = vpop.permute.xlu0 %2269 }
0x152d   :  { %v2170_v53 = vmul.f32 %v3664_v51, %v3660_v27  ;;  %v2264_v61 = vpop.permute.xlu1 %2263  ;;  %v2285_v4 = vsel %vm270_vm7, %v2283_v11, %v2270_v10 }
0x152e   :  { %v2284_v14 = vsel %vm182_vm5, %v4122_v33, %v2264_v61 }
0x152f   :  { %3199 = vmatprep.mubr.msk.f32.mxu0 %vm270_vm7, %v2170_v53 }
0x1530   :  { %3200 = vmatmul.mubr.msk.f32.vlgmr.msra.gmra.mrb[18].mxu0 %vm270_vm7, %v2171_v54 }
0x1531   :  { %3385 = vmatpush3.bf16.msra.mxu0 %v3382_v48  ;;  %v2272_v0 = vpop.permute.xlu1 %2271  ;;  %v3572_v48 = vpack.i.bf16 %v2865_v55, %v2864_v45 }
0x1532   :  { %3387 = vmatprep.subr.bf16.mxu0 %v3386_v56  ;;  %v2286_v16 = vsel %vm270_vm7, %v2284_v14, %v2272_v0 }
0x1535   :  { %3389 = vmatpush3.bf16.msra.mxu0 %v3386_v56 }
0x1603   :  { %v3201_v59 = vpop.f32.mrb[18].mxu0 }
0x1604   :  { %2279 = vrot.lane.b32.xlu1 %v3201_v59, %s3705_s23  ;;  %v2250_v60 = vpop.f32.mrb[19].mxu0 }
0x1605   :  { %2277 = vrot.lane.b32.xlu0 %v2250_v60, %s3705_s23 }
0x1676   :  { %v2280_v2 = vpop.permute.xlu1 %2279 }
0x1677   :  { %v2278_v15 = vpop.permute.xlu0 %2277  ;;  %v2288_v42 = vsel %vm972_vm8, %v2286_v16, %v2280_v2 }
0x1678   :  { %v2287_v17 = vsel %vm972_vm8, %v2285_v4, %v2278_v15  ;;  %v2417_v4 = vrot.slane %v4051_v63, %v1102_v30 }
0x1679   :  { %3210 = vmatprep.mubr.msk.f32.mxu0 %vm37_vm0, %v2287_v17 }
0x167a   :  { %3211 = vmatmul.mubr.msk.f32.vlgmr.msra.gmra.mrb[20].mxu0 %vm37_vm0, %v2288_v42 }
0x174d   :  { %v3212_v19 = vpop.f32.mrb[20].mxu0 }
0x174e   :  { %v2387_v13 = vadd.f32 %v3212_v19, %v4012_v21  ;;  %v2377_v58 = vpop.f32.mrb[21].mxu0 }
0x174f   :  { %v2386_v33 = vadd.f32 %v2377_v58, %v4014_v22 }
0x1750   :  { %v4186_v5 = vadd.f32 %v2391_v43, %v2387_v13  ;;  %v2443_v13 = vrot.slane %v4051_v63, %v1128_v35 }
0x1751   :  { %v4188_v6 = vadd.f32 %v2391_v43, %v2386_v33 }
0x1752   :  { %v2397_v7 = vsel %vm37_vm0, %v4186_v5, 0.0 }
0x1753   :  { %2398 = vadd.xlane.f32.xlu1 %v2397_v7  ;;  %v2394_v9 = vsel %vm37_vm0, %v4188_v6, 0.0 }
0x1754   :  { %2395 = vadd.xlane.f32.xlu0 %v2394_v9 }
0x1764   :  { %3563 = vrot.lane.b32.xlu1 %v3562_v38, %s3691_s6 }
0x1768   :  { %3568 = vrot.lane.b32.xlu1 %v3567_v32, %s3691_s6 }
0x176c   :  { %3573 = vrot.lane.b32.xlu1 %v3572_v48, %s3691_s6 }
0x17e0   :  { %v2399_v12 = vpop.xlane.xlu1 %2398 }
0x17e1   :  { %v2401_v18 = vmul.f32 0.03125, %v2399_v12  ;;  %v2396_v23 = vpop.xlane.xlu0 %2395 }
0x17e2   :  { %v2400_v24 = vmul.f32 0.03125, %v2396_v23 }
0x17e3   :  { %v4195_v21 = vsub.f32 %v4186_v5, %v2401_v18 }
0x17e4   :  { %v2402_v22 = vsub.f32 %v4188_v6, %v2400_v24  ;;  %v3564_v15 = vpop.permute.xlu1 %3563 }
0x17e5   :  { %v2405_v26 = vmul.f32 %v4195_v21, %v4195_v21  ;;  %v3566_v42 = vunpack.i.h.bf16 %v3564_v15  ;;  %v3565_v43 = vunpack.i.l.bf16 %v3564_v15  ;;  %v2419_v30 = vmul.f32 %v2417_v4, %v4195_v21 }
0x17e6   :  { %v2404_v25 = vmul.f32 %v2402_v22, %v2402_v22  ;;  %v2418_v19 = vmul.f32 %v2417_v4, %v2402_v22  ;;  %v2449_v21 = vrot.slane %v4051_v63, %v1134_v1 }
0x17e7   :  { %v2409_v27 = vsel %vm37_vm0, %v2405_v26, 0.0  ;;  %v3402_v7 = vpack.c.bf16 %v3566_v42, %v3565_v43 }
0x17e8   :  { %v2406_v39 = vsel %vm37_vm0, %v2404_v25, 0.0  ;;  %v3569_v12 = vpop.permute.xlu1 %3568 }
0x17e9   :  { %2407 = vadd.xlane.f32.xlu0 %v2406_v39  ;;  %v3571_v18 = vunpack.i.h.bf16 %v3569_v12  ;;  %v3570_v23 = vunpack.i.l.bf16 %v3569_v12 }
0x17eb   :  { %v3406_v39 = vpack.c.bf16 %v3571_v18, %v3570_v23 }
0x17ec   :  { %v3574_v26 = vpop.permute.xlu1 %3573 }
0x17ed   :  { %2410 = vadd.xlane.f32.xlu0 %v2409_v27  ;;  %v3576_v35 = vunpack.i.h.bf16 %v3574_v26  ;;  %v3575_v27 = vunpack.i.l.bf16 %v3574_v26 }
0x17ef   :  { %v3410_v3 = vpack.c.bf16 %v3576_v35, %v3575_v27 }
0x1803   :  { %3558 = vrot.lane.b32.xlu0 %v3557_v41, %s3691_s6 }
0x1876   :  { %v2408_v36 = vpop.xlane.xlu0 %2407 }
0x1877   :  { %v2412_v49 = vmul.f32 0.032258064, %v2408_v36 }
0x1879   :  { %3665 = vrsqrt.f32 %v2412_v49  ;;  %vm2422_vm3 = vcmp.eq.f32.partialorder %v2412_v49, inf  ;;  %v2425_v54 = vand.u32 2147483648, %v2412_v49  ;;  %vm2424_vm4 = vcmp.eq.f32.partialorder %v2412_v49, 0.0 }
0x187a   :  { %v2411_v57 = vpop.xlane.xlu0 %2410 }
0x187b   :  { %v2413_v50 = vmul.f32 0.032258064, %v2411_v57 }
0x187d   :  { %3667 = vrsqrt.f32 %v2413_v50  ;;  %vm2429_vm5 = vcmp.eq.f32.partialorder %v2413_v50, inf  ;;  %v2432_v0 = vand.u32 2147483648, %v2413_v50  ;;  %vm2431_vm6 = vcmp.eq.f32.partialorder %v2413_v50, 0.0 }
0x187e   :  { %v3559_v14 = vpop.permute.xlu0 %3558 }
0x187f   :  { %v3561_v16 = vunpack.i.h.bf16 %v3559_v14  ;;  %v3560_v17 = vunpack.i.l.bf16 %v3559_v14 }
0x1881   :  { %v3398_v33 = vpack.c.bf16 %v3561_v16, %v3560_v17 }
0x1883   :  { %v3666_v51 = vpop.eup %3665  ;;  %3399 = vmatprep.subr.bf16.mxu0 %v3398_v33 }
0x1884   :  { %v2421_v53 = vmul.f32 %v3666_v51, %v2412_v49  ;;  %3401 = vmatpush3.bf16.msra.mxu0 %v3398_v33 }
0x1885   :  { %3403 = vmatprep.subr.bf16.mxu0 %v3402_v7 }
0x1886   :  { %v2423_v56 = vsel %vm2422_vm3, %v2412_v49, %v2421_v53 }
0x1887   :  { %v3668_v59 = vpop.eup %3667  ;;  %v2426_v60 = vsel %vm2424_vm4, %v2425_v54, %v2423_v56  ;;  %v2654_v56 = vld [vmem:[%s4283_s4] sm:$0xff] }
0x1888   :  { %v2428_v61 = vmul.f32 %v3668_v59, %v2413_v50  ;;  %v2434_v62 = vadd.f32 1e-06, %v2426_v60  ;;  %3405 = vmatpush3.bf16.msra.mxu0 %v3402_v7  ;;  %v2655_v59 = vld [vmem:[%s4283_s4 + $0x8] sm:$0xff]  ;;  %v2656_v60 = vld [vmem:[%s4283_s4 + $0x10] sm:$0xff] }
0x1889   :  { %3407 = vmatprep.subr.bf16.mxu0 %v3406_v39 }
0x188a   :  { %v2430_v10 = vsel %vm2429_vm5, %v2413_v50, %v2428_v61  ;;  %3669 = vrcp.f32 %v2434_v62  ;;  %v3414_v61 = vpack.c.bf16 %v2655_v59, %v2654_v56  ;;  %v2657_v62 = vld [vmem:[%s4283_s4 + $0x18] sm:$0xff] }
0x188b   :  { %v2433_v11 = vsel %vm2431_vm6, %v2432_v0, %v2430_v10  ;;  %v3418_v0 = vpack.c.bf16 %v2657_v62, %v2656_v60 }
0x188c   :  { %v2435_v2 = vadd.f32 1e-06, %v2433_v11  ;;  %3409 = vmatpush3.bf16.msra.mxu0 %v3406_v39  ;;  %3415 = vmatprep.subr.bf16.mxu1 %v3414_v61 }
0x188d   :  { %3411 = vmatprep.subr.bf16.mxu0 %v3410_v3 }
0x188e   :  { %3671 = vrcp.f32 %v2435_v2 }
0x1890   :  { %3413 = vmatpush3.bf16.msra.mxu0 %v3410_v3 }
0x1894   :  { %v3670_v58 = vpop.eup %3669 }
0x1895   :  { %v2437_v9 = vmul.f32 %v3670_v58, %v2418_v19 }
0x1897   :  { %v2444_v24 = vadd.f32 %v2443_v13, %v2437_v9  ;;  %v2658_v9 = vld [vmem:[%s4283_s4 + $0x20] sm:$0xff] }
0x1898   :  { %v3672_v25 = vpop.eup %3671  ;;  %v2682_v18 = vrot.slane %v2658_v9, %v3939_v44 }
0x1899   :  { %v2439_v22 = vmul.f32 %v3672_v25, %v2419_v30  ;;  %3221 = vmatprep.mubr.msk.f32.mxu1 %vm37_vm0, %v2444_v24  ;;  %v2708_v30 = vrot.slane %v2658_v9, %v3783_v37 }
0x189b   :  { %v2445_v46 = vadd.f32 %v2443_v13, %v2439_v22 }
0x189d   :  { %3222 = vmatmul.mubr.msk.f32.vlgmr.msra.gmra.mrb[22].mxu1 %vm37_vm0, %v2445_v46  ;;  %v2714_v46 = vrot.slane %v2658_v9, %v3799_v52 }
0x189e   :  { %3417 = vmatpush3.bf16.msra.mxu1 %v3414_v61 }
0x189f   :  { %3419 = vmatprep.subr.bf16.mxu1 %v3418_v0 }
0x18a2   :  { %3421 = vmatpush3.bf16.msra.mxu1 %v3418_v0 }
0x1970   :  { %v3223_v47 = vpop.f32.mrb[22].mxu1 }
0x1971   :  { %v2528_v28 = vadd.f32 %v3223_v47, %v2449_v21  ;;  %v2522_v34 = vpop.f32.mrb[23].mxu1 }
0x1972   :  { %v2523_v40 = vadd.f32 %v2522_v34, %v2449_v21 }
0x1973   :  { %v2532_v38 = vmax.f32 %v2528_v28, 0.0 }
0x1974   :  { %v2531_v41 = vmax.f32 %v2523_v40, 0.0 }
0x1976   :  { %3240 = vmatprep.mubr.msk.f32.mxu0 %vm1251_vm13, %v2531_v41 }
0x1977   :  { %3241 = vmatmul.mubr.msk.f32.vlgmr.msra.gmra.mrb[22].mxu0 %vm1251_vm13, %v2532_v38 }
0x1a4a   :  { %v3242_v20 = vpop.f32.mrb[22].mxu0 }
0x1a4b   :  { %v2647_v32 = vadd.f32 %v3242_v20, %v4186_v5  ;;  %v2637_v45 = vpop.f32.mrb[23].mxu0 }
0x1a4c   :  { %v2646_v1 = vadd.f32 %v2637_v45, %v4188_v6 }
0x1a4d   :  { %v2653_v55 = vadd.f32 %v2651_v29, %v2647_v32 }
0x1a4e   :  { %v2652_v48 = vadd.f32 %v2651_v29, %v2646_v1 }
0x1a4f   :  { %v2662_v36 = vsel %vm37_vm0, %v2653_v55, 0.0 }
0x1a50   :  { %2663 = vadd.xlane.f32.xlu1 %v2662_v36  ;;  %v2659_v49 = vsel %vm37_vm0, %v2652_v48, 0.0 }
0x1a51   :  { %2660 = vadd.xlane.f32.xlu0 %v2659_v49 }
0x1add   :  { %v2664_v57 = vpop.xlane.xlu1 %2663 }
0x1ade   :  { %v2666_v50 = vmul.f32 0.03125, %v2664_v57  ;;  %v2661_v51 = vpop.xlane.xlu0 %2660 }
0x1adf   :  { %v2665_v31 = vmul.f32 0.03125, %v2661_v51 }
0x1ae0   :  { %v2668_v53 = vsub.f32 %v2653_v55, %v2666_v50 }
0x1ae1   :  { %v2667_v8 = vsub.f32 %v2652_v48, %v2665_v31 }
0x1ae2   :  { %v2670_v54 = vmul.f32 %v2668_v53, %v2668_v53  ;;  %v2684_v39 = vmul.f32 %v2682_v18, %v2668_v53 }
0x1ae3   :  { %v2669_v63 = vmul.f32 %v2667_v8, %v2667_v8  ;;  %v2683_v23 = vmul.f32 %v2682_v18, %v2667_v8 }
0x1ae4   :  { %v2674_v6 = vsel %vm37_vm0, %v2670_v54, 0.0 }
0x1ae5   :  { %v2671_v5 = vsel %vm37_vm0, %v2669_v63, 0.0 }
0x1ae6   :  { %2672 = vadd.xlane.f32.xlu0 %v2671_v5 }
0x1aea   :  { %2675 = vadd.xlane.f32.xlu0 %v2674_v6 }
0x1b73   :  { %v2673_v10 = vpop.xlane.xlu0 %2672 }
0x1b74   :  { %v2677_v11 = vmul.f32 0.032258064, %v2673_v10 }
0x1b76   :  { %3673 = vrsqrt.f32 %v2677_v11  ;;  %vm2687_vm7 = vcmp.eq.f32.partialorder %v2677_v11, inf  ;;  %v2690_v16 = vand.u32 2147483648, %v2677_v11  ;;  %vm2689_vm8 = vcmp.eq.f32.partialorder %v2677_v11, 0.0 }
0x1b77   :  { %v2676_v2 = vpop.xlane.xlu0 %2675 }
0x1b78   :  { %v2678_v4 = vmul.f32 0.032258064, %v2676_v2 }
0x1b7a   :  { %3675 = vrsqrt.f32 %v2678_v4  ;;  %vm2694_vm9 = vcmp.eq.f32.partialorder %v2678_v4, inf  ;;  %v2697_v58 = vand.u32 2147483648, %v2678_v4  ;;  %vm2696_vm10 = vcmp.eq.f32.partialorder %v2678_v4, 0.0 }
0x1b80   :  { %v3674_v14 = vpop.eup %3673 }
0x1b81   :  { %v2686_v15 = vmul.f32 %v3674_v14, %v2677_v11 }
0x1b83   :  { %v2688_v17 = vsel %vm2687_vm7, %v2677_v11, %v2686_v15 }
0x1b84   :  { %v3676_v42 = vpop.eup %3675  ;;  %v2691_v43 = vsel %vm2689_vm8, %v2690_v16, %v2688_v17 }
0x1b85   :  { %v2693_v19 = vmul.f32 %v3676_v42, %v2678_v4  ;;  %v2699_v13 = vadd.f32 1e-06, %v2691_v43 }
0x1b87   :  { %v2695_v33 = vsel %vm2694_vm9, %v2678_v4, %v2693_v19  ;;  %3677 = vrcp.f32 %v2699_v13 }
0x1b88   :  { %v2698_v7 = vsel %vm2696_vm10, %v2697_v58, %v2695_v33 }
0x1b89   :  { %v2700_v12 = vadd.f32 1e-06, %v2698_v7 }
0x1b8b   :  { %3679 = vrcp.f32 %v2700_v12 }
0x1b91   :  { %v3678_v24 = vpop.eup %3677 }
0x1b92   :  { %v2702_v25 = vmul.f32 %v3678_v24, %v2683_v23 }
0x1b94   :  { %v2709_v22 = vadd.f32 %v2708_v30, %v2702_v25 }
0x1b95   :  { %v3680_v26 = vpop.eup %3679 }
0x1b96   :  { %v2704_v35 = vmul.f32 %v3680_v26, %v2684_v39  ;;  %3251 = vmatprep.mubr.msk.f32.mxu1 %vm37_vm0, %v2709_v22 }
0x1b98   :  { %v2710_v27 = vadd.f32 %v2708_v30, %v2704_v35 }
0x1b9a   :  { %3252 = vmatmul.mubr.msk.f32.vlgmr.msra.gmra.mrb[24].mxu1 %vm37_vm0, %v2710_v27 }
0x1c6d   :  { %v3253_v3 = vpop.f32.mrb[24].mxu1 }
0x1c6e   :  { %v2793_v21 = vadd.f32 %v3253_v3, %v2714_v46  ;;  %v2787_v47 = vpop.f32.mrb[25].mxu1 }
0x1c6f   :  { %v2788_v44 = vadd.f32 %v2787_v47, %v2714_v46 }
0x1c70   :  { %2798 = vmax.xlane.f32.xlu1 %v2793_v21 }
0x1c71   :  { %2796 = vmax.xlane.f32.xlu0 %v2788_v44 }
0x1cfd   :  { %v2799_v37 = vpop.xlane.xlu1 %2798 }
0x1cfe   :  { %v2801_v28 = vsub.f32 %v2793_v21, %v2799_v37  ;;  %v2797_v34 = vpop.xlane.xlu0 %2796 }
0x1cff   :  { %v2800_v40 = vsub.f32 %v2788_v44, %v2797_v34 }
0x1d00   :  { %v2804_v41 = vmul.f32 1.442695, %v2801_v28 }
0x1d01   :  { %v2802_v38 = vmul.f32 1.442695, %v2800_v40 }
0x1d02   :  { %3681 = vpow2.f32 %v2804_v41 }
0x1d03   :  { %3683 = vpow2.f32 %v2802_v38 }
0x1d0c   :  { %v3682_v29 = vpop.eup %3681 }
0x1d0d   :  { %v3684_v20 = vpop.eup %3683  ;;  %2808 = vadd.xlane.f32.xlu1 %v3682_v29 }
0x1d0e   :  { %2806 = vadd.xlane.f32.xlu0 %v3684_v20 }
0x1d9a   :  { %v2809_v32 = vpop.xlane.xlu1 %2808 }
0x1d9b   :  { %3685 = vlog2.f32 %v2809_v32  ;;  %v2807_v52 = vpop.xlane.xlu0 %2806 }
0x1d9c   :  { %3687 = vlog2.f32 %v2807_v52 }
0x1da5   :  { %v3686_v45 = vpop.eup %3685 }
0x1da6   :  { %v3688_v1 = vpop.eup %3687  ;;  %v2813_v55 = vmul.f32 0.6931472, %v3686_v45 }
0x1da7   :  { %v2811_v48 = vmul.f32 0.6931472, %v3688_v1 }
0x1da8   :  { %v2815_v36 = vsub.f32 %v2801_v28, %v2813_v55 }
0x1da9   :  { %v2814_v49 = vsub.f32 %v2800_v40, %v2811_v48 }
0x1daa   :  { %2817 = vst [vmem:[%s4284_s5 + $0x8] sm:$0xff] %v2815_v36 }
0x1dab   :  { %2816 = vst [vmem:[%s4284_s5] sm:$0xff] %v2814_v49 }

</bundles_post_ra>
